<compile_context>
chip_gen: v6e
topology: v6e:2x2x1
jax: 0.10.0
libtpu: 0.0.40
codegen_flags: <defaults>
</compile_context>

<pallas_src>
import functools

import jax
import jax.numpy as jnp
from jax.experimental import pallas as pl
from jax.experimental.pallas import tpu as pltpu

# ------------------------- model config (small) -------------------------
B, S, H, NH, FF, L, V = 2, 8, 32, 2, 64, 2, 64
HD = H // NH
LN_EPS = 1e-5

WEIGHT_NAMES = ['wq', 'bq', 'wk', 'bk', 'wv', 'bv', 'wo', 'bo',
                'ln1g', 'ln1b', 'w1', 'b1', 'w2', 'b2', 'ln2g', 'ln2b']


# ------------------------------ fused kernel -----------------------------
def fused_encoder_kernel(emb_ref, maskb_ref, embg_ref, embb_ref,
                         wq_ref, bq_ref, wk_ref, bk_ref, wv_ref, bv_ref,
                         wo_ref, bo_ref, ln1g_ref, ln1b_ref,
                         w1_ref, b1_ref, w2_ref, b2_ref, ln2g_ref, ln2b_ref,
                         wp_ref, bp_ref,
                         out_ref, h_ref,
                         *, batch, seq, hidden, num_heads, head_dim, eps):
    lidx = pl.program_id(0)
    rows = batch * seq

    def layernorm(x, g, b):
        # keep all layernorm / softmax elementwise math in f32 (v5e has no bf16 VPU)
        mu = jnp.mean(x, axis=-1, keepdims=True)
        var = jnp.mean((x - mu) ** 2, axis=-1, keepdims=True)
        return (x - mu) * jax.lax.rsqrt(var + eps) * g + b

    # ---- embedding layernorm: only on the first grid step ----
    @pl.when(lidx == 0)
    def _():
        e = emb_ref[...].reshape(rows, hidden).astype(jnp.float32)
        h_ref[...] = layernorm(e, embg_ref[...], embb_ref[...])

    x = h_ref[...]                                   # (B*S, H) f32, VMEM-resident
    x_bf = x.astype(jnp.bfloat16)                    # bf16 MXU operands, f32 accum
    neg_bias = maskb_ref[...]                        # (B, 1, S) additive key mask, f32
    scale = 1.0 / (head_dim ** 0.5)

    # ---- multi-head self-attention (weights pre-split per head; no lane slicing) ----
    attn = jnp.zeros((rows, hidden), jnp.float32)
    for h in range(num_heads):
        q = jnp.dot(x_bf, wq_ref[0, h], preferred_element_type=jnp.float32) + bq_ref[0, h]
        k = jnp.dot(x_bf, wk_ref[0, h], preferred_element_type=jnp.float32) + bk_ref[0, h]
        v = jnp.dot(x_bf, wv_ref[0, h], preferred_element_type=jnp.float32) + bv_ref[0, h]
        qb = q.reshape(batch, seq, head_dim).astype(jnp.bfloat16)
        kb = k.reshape(batch, seq, head_dim).astype(jnp.bfloat16)
        vb = v.reshape(batch, seq, head_dim).astype(jnp.bfloat16)
        sc = jnp.einsum('bqd,bkd->bqk', qb, kb,
                        preferred_element_type=jnp.float32) * scale + neg_bias
        sc = sc - jnp.max(sc, axis=-1, keepdims=True)
        p = jnp.exp(sc)
        p = p * pl.reciprocal(jnp.sum(p, axis=-1, keepdims=True), approx=True)
        ctx = jnp.einsum('bqk,bkd->bqd', p.astype(jnp.bfloat16), vb,
                         preferred_element_type=jnp.float32)
        attn = attn + jnp.dot(ctx.reshape(rows, head_dim).astype(jnp.bfloat16),
                              wo_ref[0, h], preferred_element_type=jnp.float32)

    # ---- residual + LN1, feed-forward, residual + LN2 ----
    h1 = layernorm(x + attn + bo_ref[0], ln1g_ref[0], ln1b_ref[0])
    f = jnp.dot(h1.astype(jnp.bfloat16), w1_ref[0],
                preferred_element_type=jnp.float32) + b1_ref[0]
    # tanh-approx GELU (HF RoBERTa uses exact erf GELU; tiny numerical drift)
    f = jax.nn.gelu(f, approximate=True)
    f = jnp.dot(f.astype(jnp.bfloat16), w2_ref[0],
                preferred_element_type=jnp.float32) + b2_ref[0]
    y = layernorm(h1 + f, ln2g_ref[0], ln2b_ref[0])
    h_ref[...] = y                                   # stays in VMEM for next layer

    # ---- pooler ([CLS] -> dense -> tanh) + F.normalize(p=2, dim=1): last step only ----
    @pl.when(lidx == pl.num_programs(0) - 1)
    def _():
        cls = y.reshape(batch, seq, hidden)[:, 0, :]             # (B, H)
        pooled = jnp.tanh(jnp.dot(cls.astype(jnp.bfloat16), wp_ref[...],
                                  preferred_element_type=jnp.float32) + bp_ref[...])
        sq = jnp.sum(pooled * pooled, axis=1, keepdims=True)
        inv = jax.lax.rsqrt(jnp.maximum(sq, 1e-24))              # eps=1e-12 on the norm
        out_ref[...] = (pooled * inv).astype(out_ref.dtype)


# ---------------------------- pallas wrapper ------------------------------
def _per_layer_spec(arr):
    nd = arr.ndim
    blk = (1,) + arr.shape[1:]
    return pl.BlockSpec(blk, lambda l, _nd=nd: (l,) + (0,) * (_nd - 1))


def _const_spec(arr):
    nd = arr.ndim
    return pl.BlockSpec(arr.shape, lambda l, _nd=nd: (0,) * _nd)


def codebert_forward(params, code_inputs):
    """Equivalent of CodeBertModel.forward(code_inputs=...)."""
    b, s = code_inputs.shape
    # attention_mask = code_inputs.ne(1)  (padding token id == 1), as additive bias
    mask_bias = jnp.where(code_inputs == 1, -1e9, 0.0).astype(jnp.float32).reshape(b, 1, s)
    # embedding gather is glue outside the kernel; everything else is in-kernel
    emb = (params['word_emb'][code_inputs] + params['pos_emb'][None, :s, :]).astype(jnp.float32)

    layer_args = [params[n] for n in WEIGHT_NAMES]
    in_specs = ([pl.BlockSpec((b, s, H), lambda l: (0, 0, 0)),
                 pl.BlockSpec((b, 1, s), lambda l: (0, 0, 0)),
                 _const_spec(params['emb_ln_g']),
                 _const_spec(params['emb_ln_b'])]
                + [_per_layer_spec(a) for a in layer_args]
                + [_const_spec(params['wp']), _const_spec(params['bp'])])

    kernel = functools.partial(fused_encoder_kernel, batch=b, seq=s, hidden=H,
                               num_heads=NH, head_dim=HD, eps=LN_EPS)
    return pl.pallas_call(
        kernel,
        out_shape=jax.ShapeDtypeStruct((b, H), jnp.float32),
        grid=(L,),
        in_specs=in_specs,
        out_specs=pl.BlockSpec((b, H), lambda l: (0, 0)),
        scratch_shapes=[pltpu.VMEM((b * s, H), jnp.float32)],
        compiler_params=pltpu.CompilerParams(dimension_semantics=("arbitrary",)),
    )(emb, mask_bias, params['emb_ln_g'], params['emb_ln_b'],
      *layer_args, params['wp'], params['bp'])


# ----------------------------- parameters --------------------------------
def init_params(key):
    ks = jax.random.split(key, 16)
    f32 = jnp.float32

    def wf(k, shape, scale=0.02):
        return jax.random.normal(k, shape, f32) * scale

    def wb(k, shape, scale=0.02):           # matmul weights stored as bf16 (halves DMA)
        return wf(k, shape, scale).astype(jnp.bfloat16)

    return {
        'word_emb': wf(ks[0], (V, H)),
        'pos_emb':  wf(ks[1], (S, H)),
        'emb_ln_g': jnp.ones((1, H), f32),
        'emb_ln_b': jnp.zeros((1, H), f32),
        # attention weights pre-split per head (column/row head blocks on a leading axis)
        'wq': wb(ks[2], (L, NH, H, HD)), 'bq': wf(ks[3], (L, NH, 1, HD)),
        'wk': wb(ks[4], (L, NH, H, HD)), 'bk': wf(ks[5], (L, NH, 1, HD)),
        'wv': wb(ks[6], (L, NH, H, HD)), 'bv': wf(ks[7], (L, NH, 1, HD)),
        'wo': wb(ks[8], (L, NH, HD, H)), 'bo': wf(ks[9], (L, 1, H)),
        'ln1g': jnp.ones((L, 1, H), f32), 'ln1b': jnp.zeros((L, 1, H), f32),
        'w1': wb(ks[10], (L, H, FF)), 'b1': wf(ks[11], (L, 1, FF)),
        'w2': wb(ks[12], (L, FF, H)), 'b2': wf(ks[13], (L, 1, H)),
        'ln2g': jnp.ones((L, 1, H), f32), 'ln2b': jnp.zeros((L, 1, H), f32),
        'wp': wb(ks[14], (H, H)), 'bp': wf(ks[15], (1, H)),
    }


# --------------------------- pure-JAX reference ---------------------------
def _ref_layernorm(x, g, b, eps=LN_EPS):
    mu = jnp.mean(x, axis=-1, keepdims=True)
    var = jnp.mean((x - mu) ** 2, axis=-1, keepdims=True)
    return (x - mu) * jax.lax.rsqrt(var + eps) * g + b


def reference_forward(params, code_inputs):
    b, s = code_inputs.shape
    bias = jnp.where(code_inputs == 1, -1e9, 0.0).astype(jnp.float32)[:, None, :]
    x = params['word_emb'][code_inputs] + params['pos_emb'][None, :s, :]
    x = _ref_layernorm(x, params['emb_ln_g'], params['emb_ln_b'])
    for l in range(L):
        attn = jnp.zeros_like(x)
        for hh in range(NH):
            wq = params['wq'][l, hh].astype(jnp.float32)
            wk = params['wk'][l, hh].astype(jnp.float32)
            wv = params['wv'][l, hh].astype(jnp.float32)
            wo = params['wo'][l, hh].astype(jnp.float32)
            q = jnp.einsum('bsh,hd->bsd', x, wq) + params['bq'][l, hh]
            k = jnp.einsum('bsh,hd->bsd', x, wk) + params['bk'][l, hh]
            v = jnp.einsum('bsh,hd->bsd', x, wv) + params['bv'][l, hh]
            sc = jnp.einsum('bqd,bkd->bqk', q, k) / (HD ** 0.5) + bias
            p = jax.nn.softmax(sc, axis=-1)
            ctx = jnp.einsum('bqk,bkd->bqd', p, v)
            attn = attn + jnp.einsum('bqd,dh->bqh', ctx, wo)
        h1 = _ref_layernorm(x + attn + params['bo'][l], params['ln1g'][l], params['ln1b'][l])
        f = jnp.einsum('bsh,hf->bsf', h1, params['w1'][l].astype(jnp.float32)) + params['b1'][l]
        f = jax.nn.gelu(f, approximate=True)
        f = jnp.einsum('bsf,fh->bsh', f, params['w2'][l].astype(jnp.float32)) + params['b2'][l]
        x = _ref_layernorm(h1 + f, params['ln2g'][l], params['ln2b'][l])
    cls = x[:, 0, :]
    pooled = jnp.tanh(cls @ params['wp'].astype(jnp.float32) + params['bp'])
    nrm = jnp.sqrt(jnp.sum(pooled * pooled, axis=1, keepdims=True))
    return pooled / jnp.maximum(nrm, 1e-12)


# --------------------------------- main -----------------------------------
if __name__ == "__main__":
    key = jax.random.PRNGKey(0)
    pkey, ikey = jax.random.split(key)
    params = init_params(pkey)

    # deterministic token ids in [0, V); mark the tail of sequence 1 as padding (id == 1)
    code_inputs = jax.random.randint(ikey, (B, S), 0, V, dtype=jnp.int32)
    code_inputs = code_inputs.at[1, -2:].set(1)

    forward = jax.jit(codebert_forward)
    out = jax.block_until_ready(forward(params, code_inputs))
    ref = jax.block_until_ready(reference_forward(params, code_inputs))

    assert out.shape == (B, H)
    assert bool(jnp.all(jnp.isfinite(out)))
    # L2-normalized rows should have unit norm
    norms = jnp.sqrt(jnp.sum(out * out, axis=1))
    assert bool(jnp.all(jnp.abs(norms - 1.0) < 1e-3))
    # bf16 MXU operands + approx reciprocal => small drift vs the f32 reference
    err = float(jnp.max(jnp.abs(out - ref)))
    assert err < 5e-2, f"max abs err vs reference: {err}"
    print("KERNEL_OK")
</pallas_src>

<mosaic_0001>
module attributes {stable_mosaic.version = 11 : i64} {
  func.func @fused_encoder_kernel(%arg0: i32, %arg1: memref<2x8x32xf32, #tpu.memory_space<vmem>>, %arg2: memref<2x1x8xf32, #tpu.memory_space<vmem>>, %arg3: memref<1x32xf32, #tpu.memory_space<vmem>>, %arg4: memref<1x32xf32, #tpu.memory_space<vmem>>, %arg5: memref<1x2x32x16xbf16, #tpu.memory_space<vmem>>, %arg6: memref<1x2x1x16xf32, #tpu.memory_space<vmem>>, %arg7: memref<1x2x32x16xbf16, #tpu.memory_space<vmem>>, %arg8: memref<1x2x1x16xf32, #tpu.memory_space<vmem>>, %arg9: memref<1x2x32x16xbf16, #tpu.memory_space<vmem>>, %arg10: memref<1x2x1x16xf32, #tpu.memory_space<vmem>>, %arg11: memref<1x2x16x32xbf16, #tpu.memory_space<vmem>>, %arg12: memref<1x1x32xf32, #tpu.memory_space<vmem>>, %arg13: memref<1x1x32xf32, #tpu.memory_space<vmem>>, %arg14: memref<1x1x32xf32, #tpu.memory_space<vmem>>, %arg15: memref<1x32x64xbf16, #tpu.memory_space<vmem>>, %arg16: memref<1x1x64xf32, #tpu.memory_space<vmem>>, %arg17: memref<1x64x32xbf16, #tpu.memory_space<vmem>>, %arg18: memref<1x1x32xf32, #tpu.memory_space<vmem>>, %arg19: memref<1x1x32xf32, #tpu.memory_space<vmem>>, %arg20: memref<1x1x32xf32, #tpu.memory_space<vmem>>, %arg21: memref<32x32xbf16, #tpu.memory_space<vmem>>, %arg22: memref<1x32xf32, #tpu.memory_space<vmem>>, %arg23: memref<2x32xf32, #tpu.memory_space<vmem>>, %arg24: memref<16x32xf32, #tpu.memory_space<vmem>>) attributes {dimension_semantics = [#tpu.dimension_semantics<arbitrary>], iteration_bounds = array<i64: 2>, scalar_prefetch = 0 : i64, scratch_operands = 1 : i64, tpu.core_type = #tpu.core_type<tc>, window_params = [{pipeline_mode = #tpu.pipeline_mode<synchronous>, transform_indices = @transform_0, window_bounds = array<i64: 2, 8, 32>}, {pipeline_mode = #tpu.pipeline_mode<synchronous>, transform_indices = @transform_1, window_bounds = array<i64: 2, 1, 8>}, {pipeline_mode = #tpu.pipeline_mode<synchronous>, transform_indices = @transform_2, window_bounds = array<i64: 1, 32>}, {pipeline_mode = #tpu.pipeline_mode<synchronous>, transform_indices = @transform_3, window_bounds = array<i64: 1, 32>}, {transform_indices = @transform_4, window_bounds = array<i64: 1, 2, 32, 16>}, {transform_indices = @transform_5, window_bounds = array<i64: 1, 2, 1, 16>}, {transform_indices = @transform_6, window_bounds = array<i64: 1, 2, 32, 16>}, {transform_indices = @transform_7, window_bounds = array<i64: 1, 2, 1, 16>}, {transform_indices = @transform_8, window_bounds = array<i64: 1, 2, 32, 16>}, {transform_indices = @transform_9, window_bounds = array<i64: 1, 2, 1, 16>}, {transform_indices = @transform_10, window_bounds = array<i64: 1, 2, 16, 32>}, {transform_indices = @transform_11, window_bounds = array<i64: 1, 1, 32>}, {transform_indices = @transform_12, window_bounds = array<i64: 1, 1, 32>}, {transform_indices = @transform_13, window_bounds = array<i64: 1, 1, 32>}, {transform_indices = @transform_14, window_bounds = array<i64: 1, 32, 64>}, {transform_indices = @transform_15, window_bounds = array<i64: 1, 1, 64>}, {transform_indices = @transform_16, window_bounds = array<i64: 1, 64, 32>}, {transform_indices = @transform_17, window_bounds = array<i64: 1, 1, 32>}, {transform_indices = @transform_18, window_bounds = array<i64: 1, 1, 32>}, {transform_indices = @transform_19, window_bounds = array<i64: 1, 1, 32>}, {pipeline_mode = #tpu.pipeline_mode<synchronous>, transform_indices = @transform_20, window_bounds = array<i64: 32, 32>}, {pipeline_mode = #tpu.pipeline_mode<synchronous>, transform_indices = @transform_21, window_bounds = array<i64: 1, 32>}, {pipeline_mode = #tpu.pipeline_mode<synchronous>, transform_indices = @transform_22, window_bounds = array<i64: 2, 32>}]} {
    %c0_i32 = arith.constant 0 : i32
    %0 = arith.cmpi eq, %arg0, %c0_i32 : i32
    %1 = arith.extui %0 : i1 to i32
    %c0_i32_0 = arith.constant 0 : i32
    %2 = arith.cmpi ne, %1, %c0_i32_0 : i32
    scf.if %2 {
      %c0_124 = arith.constant 0 : index
      %c0_125 = arith.constant 0 : index
      %c0_126 = arith.constant 0 : index
      %198 = vector.load %arg1[%c0_124, %c0_125, %c0_126] : memref<2x8x32xf32, #tpu.memory_space<vmem>>, vector<2x8x32xf32>
      %199 = vector.shape_cast %198 : vector<2x8x32xf32> to vector<16x32xf32>
      %c0_127 = arith.constant 0 : index
      %c0_128 = arith.constant 0 : index
      %200 = vector.load %arg3[%c0_127, %c0_128] : memref<1x32xf32, #tpu.memory_space<vmem>>, vector<1x32xf32>
      %c0_129 = arith.constant 0 : index
      %c0_130 = arith.constant 0 : index
      %201 = vector.load %arg4[%c0_129, %c0_130] : memref<1x32xf32, #tpu.memory_space<vmem>>, vector<1x32xf32>
      %cst_131 = arith.constant dense<0.000000e+00> : vector<16xf32>
      %202 = vector.multi_reduction <add>, %199, %cst_131 [1] : vector<16x32xf32> to vector<16xf32>
      %203 = vector.shape_cast %202 : vector<16xf32> to vector<16x1xf32>
      %cst_132 = arith.constant 3.200000e+01 : f32
      %204 = vector.broadcast %cst_132 : f32 to vector<16x1xf32>
      %205 = arith.divf %203, %204 : vector<16x1xf32>
      %206 = vector.broadcast %205 : vector<16x1xf32> to vector<16x32xf32>
      %207 = arith.subf %199, %206 : vector<16x32xf32>
      %208 = arith.mulf %207, %207 : vector<16x32xf32>
      %cst_133 = arith.constant dense<0.000000e+00> : vector<16xf32>
      %209 = vector.multi_reduction <add>, %208, %cst_133 [1] : vector<16x32xf32> to vector<16xf32>
      %210 = vector.shape_cast %209 : vector<16xf32> to vector<16x1xf32>
      %cst_134 = arith.constant 3.200000e+01 : f32
      %211 = vector.broadcast %cst_134 : f32 to vector<16x1xf32>
      %212 = arith.divf %210, %211 : vector<16x1xf32>
      %213 = vector.broadcast %205 : vector<16x1xf32> to vector<16x32xf32>
      %214 = arith.subf %199, %213 : vector<16x32xf32>
      %cst_135 = arith.constant 9.99999974E-6 : f32
      %215 = vector.broadcast %cst_135 : f32 to vector<16x1xf32>
      %216 = arith.addf %212, %215 : vector<16x1xf32>
      %217 = math.rsqrt %216 : vector<16x1xf32>
      %218 = vector.broadcast %217 : vector<16x1xf32> to vector<16x32xf32>
      %219 = arith.mulf %214, %218 : vector<16x32xf32>
      %220 = vector.broadcast %200 : vector<1x32xf32> to vector<16x32xf32>
      %221 = arith.mulf %219, %220 : vector<16x32xf32>
      %222 = vector.broadcast %201 : vector<1x32xf32> to vector<16x32xf32>
      %223 = arith.addf %221, %222 : vector<16x32xf32>
      %c0_136 = arith.constant 0 : index
      %c0_137 = arith.constant 0 : index
      %224 = vector.load %arg24[%c0_136, %c0_137] : memref<16x32xf32, #tpu.memory_space<vmem>>, vector<16x32xf32>
      tpu.vector_store %arg24[%c0_136, %c0_137], %223 {strides = array<i32>} : memref<16x32xf32, #tpu.memory_space<vmem>>, vector<16x32xf32>,
    } else {
    }
    %c0 = arith.constant 0 : index
    %c0_1 = arith.constant 0 : index
    %3 = vector.load %arg24[%c0, %c0_1] : memref<16x32xf32, #tpu.memory_space<vmem>>, vector<16x32xf32>
    %4 = arith.truncf %3 : vector<16x32xf32> to vector<16x32xbf16>
    %c0_2 = arith.constant 0 : index
    %c0_3 = arith.constant 0 : index
    %c0_4 = arith.constant 0 : index
    %5 = vector.load %arg2[%c0_2, %c0_3, %c0_4] : memref<2x1x8xf32, #tpu.memory_space<vmem>>, vector<2x1x8xf32>
    %cst = arith.constant 0.000000e+00 : f32
    %6 = vector.broadcast %cst : f32 to vector<16x32xf32>
    %c0_5 = arith.constant 0 : index
    %c0_6 = arith.constant 0 : index
    %c0_7 = arith.constant 0 : index
    %c0_8 = arith.constant 0 : index
    %7 = vector.load %arg5[%c0_5, %c0_6, %c0_7, %c0_8] : memref<1x2x32x16xbf16, #tpu.memory_space<vmem>>, vector<1x1x32x16xbf16>
    %8 = vector.shape_cast %7 : vector<1x1x32x16xbf16> to vector<32x16xbf16>
    %cst_9 = arith.constant dense<0.000000e+00> : vector<16x16xf32>
    %9 = tpu.matmul %4, %8, %cst_9 {dimension_numbers = #tpu.dot_dimension_numbers<[1], [0], [0], [1], [0, 0, 1, 1], [], []>} : vector<16x32xbf16>, vector<32x16xbf16>, vector<16x16xf32> -> vector<16x16xf32>
    %c0_10 = arith.constant 0 : index
    %c0_11 = arith.constant 0 : index
    %c0_12 = arith.constant 0 : index
    %c0_13 = arith.constant 0 : index
    %10 = vector.load %arg6[%c0_10, %c0_11, %c0_12, %c0_13] : memref<1x2x1x16xf32, #tpu.memory_space<vmem>>, vector<1x1x1x16xf32>
    %11 = vector.shape_cast %10 : vector<1x1x1x16xf32> to vector<1x16xf32>
    %12 = vector.broadcast %11 : vector<1x16xf32> to vector<16x16xf32>
    %13 = arith.addf %9, %12 : vector<16x16xf32>
    %c0_14 = arith.constant 0 : index
    %c0_15 = arith.constant 0 : index
    %c0_16 = arith.constant 0 : index
    %c0_17 = arith.constant 0 : index
    %14 = vector.load %arg7[%c0_14, %c0_15, %c0_16, %c0_17] : memref<1x2x32x16xbf16, #tpu.memory_space<vmem>>, vector<1x1x32x16xbf16>
    %15 = vector.shape_cast %14 : vector<1x1x32x16xbf16> to vector<32x16xbf16>
    %cst_18 = arith.constant dense<0.000000e+00> : vector<16x16xf32>
    %16 = tpu.matmul %4, %15, %cst_18 {dimension_numbers = #tpu.dot_dimension_numbers<[1], [0], [0], [1], [0, 0, 1, 1], [], []>} : vector<16x32xbf16>, vector<32x16xbf16>, vector<16x16xf32> -> vector<16x16xf32>
    %c0_19 = arith.constant 0 : index
    %c0_20 = arith.constant 0 : index
    %c0_21 = arith.constant 0 : index
    %c0_22 = arith.constant 0 : index
    %17 = vector.load %arg8[%c0_19, %c0_20, %c0_21, %c0_22] : memref<1x2x1x16xf32, #tpu.memory_space<vmem>>, vector<1x1x1x16xf32>
    %18 = vector.shape_cast %17 : vector<1x1x1x16xf32> to vector<1x16xf32>
    %19 = vector.broadcast %18 : vector<1x16xf32> to vector<16x16xf32>
    %20 = arith.addf %16, %19 : vector<16x16xf32>
    %c0_23 = arith.constant 0 : index
    %c0_24 = arith.constant 0 : index
    %c0_25 = arith.constant 0 : index
    %c0_26 = arith.constant 0 : index
    %21 = vector.load %arg9[%c0_23, %c0_24, %c0_25, %c0_26] : memref<1x2x32x16xbf16, #tpu.memory_space<vmem>>, vector<1x1x32x16xbf16>
    %22 = vector.shape_cast %21 : vector<1x1x32x16xbf16> to vector<32x16xbf16>
    %cst_27 = arith.constant dense<0.000000e+00> : vector<16x16xf32>
    %23 = tpu.matmul %4, %22, %cst_27 {dimension_numbers = #tpu.dot_dimension_numbers<[1], [0], [0], [1], [0, 0, 1, 1], [], []>} : vector<16x32xbf16>, vector<32x16xbf16>, vector<16x16xf32> -> vector<16x16xf32>
    %c0_28 = arith.constant 0 : index
    %c0_29 = arith.constant 0 : index
    %c0_30 = arith.constant 0 : index
    %c0_31 = arith.constant 0 : index
    %24 = vector.load %arg10[%c0_28, %c0_29, %c0_30, %c0_31] : memref<1x2x1x16xf32, #tpu.memory_space<vmem>>, vector<1x1x1x16xf32>
    %25 = vector.shape_cast %24 : vector<1x1x1x16xf32> to vector<1x16xf32>
    %26 = vector.broadcast %25 : vector<1x16xf32> to vector<16x16xf32>
    %27 = arith.addf %23, %26 : vector<16x16xf32>
    %28 = vector.shape_cast %13 : vector<16x16xf32> to vector<2x8x16xf32>
    %29 = arith.truncf %28 : vector<2x8x16xf32> to vector<2x8x16xbf16>
    %30 = vector.shape_cast %20 : vector<16x16xf32> to vector<2x8x16xf32>
    %31 = arith.truncf %30 : vector<2x8x16xf32> to vector<2x8x16xbf16>
    %32 = vector.shape_cast %27 : vector<16x16xf32> to vector<2x8x16xf32>
    %33 = arith.truncf %32 : vector<2x8x16xf32> to vector<2x8x16xbf16>
    "tpu.trace_start"() <{level = 10 : i32, message = "bqd,bkd->bqk"}> : () -> ()
    %cst_32 = arith.constant dense<0.000000e+00> : vector<2x8x8xf32>
    %34 = tpu.matmul %29, %31, %cst_32 {dimension_numbers = #tpu.dot_dimension_numbers<[2], [2], [1], [1], [0, 0, 0, 1, 1, 1], [0], [0]>} : vector<2x8x16xbf16>, vector<2x8x16xbf16>, vector<2x8x8xf32> -> vector<2x8x8xf32>
    "tpu.trace_stop"() : () -> ()
    %cst_33 = arith.constant 2.500000e-01 : f32
    %35 = vector.broadcast %cst_33 : f32 to vector<2x8x8xf32>
    %36 = arith.mulf %34, %35 : vector<2x8x8xf32>
    %37 = vector.broadcast %5 : vector<2x1x8xf32> to vector<2x8x8xf32>
    %38 = arith.addf %36, %37 : vector<2x8x8xf32>
    %cst_34 = arith.constant dense<0xFF800000> : vector<2x8xf32>
    %39 = vector.multi_reduction <maximumf>, %38, %cst_34 [2] : vector<2x8x8xf32> to vector<2x8xf32>
    %40 = vector.shape_cast %39 : vector<2x8xf32> to vector<2x8x1xf32>
    %41 = vector.broadcast %40 : vector<2x8x1xf32> to vector<2x8x8xf32>
    %42 = arith.subf %38, %41 : vector<2x8x8xf32>
    %43 = math.exp %42 : vector<2x8x8xf32>
    %cst_35 = arith.constant dense<0.000000e+00> : vector<2x8xf32>
    %44 = vector.multi_reduction <add>, %43, %cst_35 [2] : vector<2x8x8xf32> to vector<2x8xf32>
    %45 = vector.shape_cast %44 : vector<2x8xf32> to vector<2x8x1xf32>
    %46 = tpu.reciprocal %45 {approx = true} : vector<2x8x1xf32> -> vector<2x8x1xf32>
    %47 = vector.broadcast %46 : vector<2x8x1xf32> to vector<2x8x8xf32>
    %48 = arith.mulf %43, %47 : vector<2x8x8xf32>
    %49 = arith.truncf %48 : vector<2x8x8xf32> to vector<2x8x8xbf16>
    "tpu.trace_start"() <{level = 10 : i32, message = "bqk,bkd->bqd"}> : () -> ()
    %cst_36 = arith.constant dense<0.000000e+00> : vector<2x8x16xf32>
    %50 = tpu.matmul %49, %33, %cst_36 {dimension_numbers = #tpu.dot_dimension_numbers<[2], [1], [1], [2], [0, 0, 0, 1, 1, 2], [0], [0]>} : vector<2x8x8xbf16>, vector<2x8x16xbf16>, vector<2x8x16xf32> -> vector<2x8x16xf32>
    "tpu.trace_stop"() : () -> ()
    %51 = vector.shape_cast %50 : vector<2x8x16xf32> to vector<16x16xf32>
    %52 = arith.truncf %51 : vector<16x16xf32> to vector<16x16xbf16>
    %c0_37 = arith.constant 0 : index
    %c0_38 = arith.constant 0 : index
    %c0_39 = arith.constant 0 : index
    %c0_40 = arith.constant 0 : index
    %53 = vector.load %arg11[%c0_37, %c0_38, %c0_39, %c0_40] : memref<1x2x16x32xbf16, #tpu.memory_space<vmem>>, vector<1x1x16x32xbf16>
    %54 = vector.shape_cast %53 : vector<1x1x16x32xbf16> to vector<16x32xbf16>
    %cst_41 = arith.constant dense<0.000000e+00> : vector<16x32xf32>
    %55 = tpu.matmul %52, %54, %cst_41 {dimension_numbers = #tpu.dot_dimension_numbers<[1], [0], [0], [1], [0, 0, 1, 1], [], []>} : vector<16x16xbf16>, vector<16x32xbf16>, vector<16x32xf32> -> vector<16x32xf32>
    %56 = arith.addf %6, %55 : vector<16x32xf32>
    %c0_42 = arith.constant 0 : index
    %c1 = arith.constant 1 : index
    %c0_43 = arith.constant 0 : index
    %c0_44 = arith.constant 0 : index
    %57 = vector.load %arg5[%c0_42, %c1, %c0_43, %c0_44] : memref<1x2x32x16xbf16, #tpu.memory_space<vmem>>, vector<1x1x32x16xbf16>
    %58 = vector.shape_cast %57 : vector<1x1x32x16xbf16> to vector<32x16xbf16>
    %cst_45 = arith.constant dense<0.000000e+00> : vector<16x16xf32>
    %59 = tpu.matmul %4, %58, %cst_45 {dimension_numbers = #tpu.dot_dimension_numbers<[1], [0], [0], [1], [0, 0, 1, 1], [], []>} : vector<16x32xbf16>, vector<32x16xbf16>, vector<16x16xf32> -> vector<16x16xf32>
    %c0_46 = arith.constant 0 : index
    %c1_47 = arith.constant 1 : index
    %c0_48 = arith.constant 0 : index
    %c0_49 = arith.constant 0 : index
    %60 = vector.load %arg6[%c0_46, %c1_47, %c0_48, %c0_49] : memref<1x2x1x16xf32, #tpu.memory_space<vmem>>, vector<1x1x1x16xf32>
    %61 = vector.shape_cast %60 : vector<1x1x1x16xf32> to vector<1x16xf32>
    %62 = vector.broadcast %61 : vector<1x16xf32> to vector<16x16xf32>
    %63 = arith.addf %59, %62 : vector<16x16xf32>
    %c0_50 = arith.constant 0 : index
    %c1_51 = arith.constant 1 : index
    %c0_52 = arith.constant 0 : index
    %c0_53 = arith.constant 0 : index
    %64 = vector.load %arg7[%c0_50, %c1_51, %c0_52, %c0_53] : memref<1x2x32x16xbf16, #tpu.memory_space<vmem>>, vector<1x1x32x16xbf16>
    %65 = vector.shape_cast %64 : vector<1x1x32x16xbf16> to vector<32x16xbf16>
    %cst_54 = arith.constant dense<0.000000e+00> : vector<16x16xf32>
    %66 = tpu.matmul %4, %65, %cst_54 {dimension_numbers = #tpu.dot_dimension_numbers<[1], [0], [0], [1], [0, 0, 1, 1], [], []>} : vector<16x32xbf16>, vector<32x16xbf16>, vector<16x16xf32> -> vector<16x16xf32>
    %c0_55 = arith.constant 0 : index
    %c1_56 = arith.constant 1 : index
    %c0_57 = arith.constant 0 : index
    %c0_58 = arith.constant 0 : index
    %67 = vector.load %arg8[%c0_55, %c1_56, %c0_57, %c0_58] : memref<1x2x1x16xf32, #tpu.memory_space<vmem>>, vector<1x1x1x16xf32>
    %68 = vector.shape_cast %67 : vector<1x1x1x16xf32> to vector<1x16xf32>
    %69 = vector.broadcast %68 : vector<1x16xf32> to vector<16x16xf32>
    %70 = arith.addf %66, %69 : vector<16x16xf32>
    %c0_59 = arith.constant 0 : index
    %c1_60 = arith.constant 1 : index
    %c0_61 = arith.constant 0 : index
    %c0_62 = arith.constant 0 : index
    %71 = vector.load %arg9[%c0_59, %c1_60, %c0_61, %c0_62] : memref<1x2x32x16xbf16, #tpu.memory_space<vmem>>, vector<1x1x32x16xbf16>
    %72 = vector.shape_cast %71 : vector<1x1x32x16xbf16> to vector<32x16xbf16>
    %cst_63 = arith.constant dense<0.000000e+00> : vector<16x16xf32>
    %73 = tpu.matmul %4, %72, %cst_63 {dimension_numbers = #tpu.dot_dimension_numbers<[1], [0], [0], [1], [0, 0, 1, 1], [], []>} : vector<16x32xbf16>, vector<32x16xbf16>, vector<16x16xf32> -> vector<16x16xf32>
    %c0_64 = arith.constant 0 : index
    %c1_65 = arith.constant 1 : index
    %c0_66 = arith.constant 0 : index
    %c0_67 = arith.constant 0 : index
    %74 = vector.load %arg10[%c0_64, %c1_65, %c0_66, %c0_67] : memref<1x2x1x16xf32, #tpu.memory_space<vmem>>, vector<1x1x1x16xf32>
    %75 = vector.shape_cast %74 : vector<1x1x1x16xf32> to vector<1x16xf32>
    %76 = vector.broadcast %75 : vector<1x16xf32> to vector<16x16xf32>
    %77 = arith.addf %73, %76 : vector<16x16xf32>
    %78 = vector.shape_cast %63 : vector<16x16xf32> to vector<2x8x16xf32>
    %79 = arith.truncf %78 : vector<2x8x16xf32> to vector<2x8x16xbf16>
    %80 = vector.shape_cast %70 : vector<16x16xf32> to vector<2x8x16xf32>
    %81 = arith.truncf %80 : vector<2x8x16xf32> to vector<2x8x16xbf16>
    %82 = vector.shape_cast %77 : vector<16x16xf32> to vector<2x8x16xf32>
    %83 = arith.truncf %82 : vector<2x8x16xf32> to vector<2x8x16xbf16>
    "tpu.trace_start"() <{level = 10 : i32, message = "bqd,bkd->bqk"}> : () -> ()
    %cst_68 = arith.constant dense<0.000000e+00> : vector<2x8x8xf32>
    %84 = tpu.matmul %79, %81, %cst_68 {dimension_numbers = #tpu.dot_dimension_numbers<[2], [2], [1], [1], [0, 0, 0, 1, 1, 1], [0], [0]>} : vector<2x8x16xbf16>, vector<2x8x16xbf16>, vector<2x8x8xf32> -> vector<2x8x8xf32>
    "tpu.trace_stop"() : () -> ()
    %cst_69 = arith.constant 2.500000e-01 : f32
    %85 = vector.broadcast %cst_69 : f32 to vector<2x8x8xf32>
    %86 = arith.mulf %84, %85 : vector<2x8x8xf32>
    %87 = vector.broadcast %5 : vector<2x1x8xf32> to vector<2x8x8xf32>
    %88 = arith.addf %86, %87 : vector<2x8x8xf32>
    %cst_70 = arith.constant dense<0xFF800000> : vector<2x8xf32>
    %89 = vector.multi_reduction <maximumf>, %88, %cst_70 [2] : vector<2x8x8xf32> to vector<2x8xf32>
    %90 = vector.shape_cast %89 : vector<2x8xf32> to vector<2x8x1xf32>
    %91 = vector.broadcast %90 : vector<2x8x1xf32> to vector<2x8x8xf32>
    %92 = arith.subf %88, %91 : vector<2x8x8xf32>
    %93 = math.exp %92 : vector<2x8x8xf32>
    %cst_71 = arith.constant dense<0.000000e+00> : vector<2x8xf32>
    %94 = vector.multi_reduction <add>, %93, %cst_71 [2] : vector<2x8x8xf32> to vector<2x8xf32>
    %95 = vector.shape_cast %94 : vector<2x8xf32> to vector<2x8x1xf32>
    %96 = tpu.reciprocal %95 {approx = true} : vector<2x8x1xf32> -> vector<2x8x1xf32>
    %97 = vector.broadcast %96 : vector<2x8x1xf32> to vector<2x8x8xf32>
    %98 = arith.mulf %93, %97 : vector<2x8x8xf32>
    %99 = arith.truncf %98 : vector<2x8x8xf32> to vector<2x8x8xbf16>
    "tpu.trace_start"() <{level = 10 : i32, message = "bqk,bkd->bqd"}> : () -> ()
    %cst_72 = arith.constant dense<0.000000e+00> : vector<2x8x16xf32>
    %100 = tpu.matmul %99, %83, %cst_72 {dimension_numbers = #tpu.dot_dimension_numbers<[2], [1], [1], [2], [0, 0, 0, 1, 1, 2], [0], [0]>} : vector<2x8x8xbf16>, vector<2x8x16xbf16>, vector<2x8x16xf32> -> vector<2x8x16xf32>
    "tpu.trace_stop"() : () -> ()
    %101 = vector.shape_cast %100 : vector<2x8x16xf32> to vector<16x16xf32>
    %102 = arith.truncf %101 : vector<16x16xf32> to vector<16x16xbf16>
    %c0_73 = arith.constant 0 : index
    %c1_74 = arith.constant 1 : index
    %c0_75 = arith.constant 0 : index
    %c0_76 = arith.constant 0 : index
    %103 = vector.load %arg11[%c0_73, %c1_74, %c0_75, %c0_76] : memref<1x2x16x32xbf16, #tpu.memory_space<vmem>>, vector<1x1x16x32xbf16>
    %104 = vector.shape_cast %103 : vector<1x1x16x32xbf16> to vector<16x32xbf16>
    %cst_77 = arith.constant dense<0.000000e+00> : vector<16x32xf32>
    %105 = tpu.matmul %102, %104, %cst_77 {dimension_numbers = #tpu.dot_dimension_numbers<[1], [0], [0], [1], [0, 0, 1, 1], [], []>} : vector<16x16xbf16>, vector<16x32xbf16>, vector<16x32xf32> -> vector<16x32xf32>
    %106 = arith.addf %56, %105 : vector<16x32xf32>
    %107 = arith.addf %3, %106 : vector<16x32xf32>
    %c0_78 = arith.constant 0 : index
    %c0_79 = arith.constant 0 : index
    %c0_80 = arith.constant 0 : index
    %108 = vector.load %arg12[%c0_78, %c0_79, %c0_80] : memref<1x1x32xf32, #tpu.memory_space<vmem>>, vector<1x1x32xf32>
    %109 = vector.shape_cast %108 : vector<1x1x32xf32> to vector<1x32xf32>
    %110 = vector.broadcast %109 : vector<1x32xf32> to vector<16x32xf32>
    %111 = arith.addf %107, %110 : vector<16x32xf32>
    %c0_81 = arith.constant 0 : index
    %c0_82 = arith.constant 0 : index
    %c0_83 = arith.constant 0 : index
    %112 = vector.load %arg13[%c0_81, %c0_82, %c0_83] : memref<1x1x32xf32, #tpu.memory_space<vmem>>, vector<1x1x32xf32>
    %113 = vector.shape_cast %112 : vector<1x1x32xf32> to vector<1x32xf32>
    %c0_84 = arith.constant 0 : index
    %c0_85 = arith.constant 0 : index
    %c0_86 = arith.constant 0 : index
    %114 = vector.load %arg14[%c0_84, %c0_85, %c0_86] : memref<1x1x32xf32, #tpu.memory_space<vmem>>, vector<1x1x32xf32>
    %115 = vector.shape_cast %114 : vector<1x1x32xf32> to vector<1x32xf32>
    %cst_87 = arith.constant dense<0.000000e+00> : vector<16xf32>
    %116 = vector.multi_reduction <add>, %111, %cst_87 [1] : vector<16x32xf32> to vector<16xf32>
    %117 = vector.shape_cast %116 : vector<16xf32> to vector<16x1xf32>
    %cst_88 = arith.constant 3.200000e+01 : f32
    %118 = vector.broadcast %cst_88 : f32 to vector<16x1xf32>
    %119 = arith.divf %117, %118 : vector<16x1xf32>
    %120 = vector.broadcast %119 : vector<16x1xf32> to vector<16x32xf32>
    %121 = arith.subf %111, %120 : vector<16x32xf32>
    %122 = arith.mulf %121, %121 : vector<16x32xf32>
    %cst_89 = arith.constant dense<0.000000e+00> : vector<16xf32>
    %123 = vector.multi_reduction <add>, %122, %cst_89 [1] : vector<16x32xf32> to vector<16xf32>
    %124 = vector.shape_cast %123 : vector<16xf32> to vector<16x1xf32>
    %cst_90 = arith.constant 3.200000e+01 : f32
    %125 = vector.broadcast %cst_90 : f32 to vector<16x1xf32>
    %126 = arith.divf %124, %125 : vector<16x1xf32>
    %127 = vector.broadcast %119 : vector<16x1xf32> to vector<16x32xf32>
    %128 = arith.subf %111, %127 : vector<16x32xf32>
    %cst_91 = arith.constant 9.99999974E-6 : f32
    %129 = vector.broadcast %cst_91 : f32 to vector<16x1xf32>
    %130 = arith.addf %126, %129 : vector<16x1xf32>
    %131 = math.rsqrt %130 : vector<16x1xf32>
    %132 = vector.broadcast %131 : vector<16x1xf32> to vector<16x32xf32>
    %133 = arith.mulf %128, %132 : vector<16x32xf32>
    %134 = vector.broadcast %113 : vector<1x32xf32> to vector<16x32xf32>
    %135 = arith.mulf %133, %134 : vector<16x32xf32>
    %136 = vector.broadcast %115 : vector<1x32xf32> to vector<16x32xf32>
    %137 = arith.addf %135, %136 : vector<16x32xf32>
    %138 = arith.truncf %137 : vector<16x32xf32> to vector<16x32xbf16>
    %c0_92 = arith.constant 0 : index
    %c0_93 = arith.constant 0 : index
    %c0_94 = arith.constant 0 : index
    %139 = vector.load %arg15[%c0_92, %c0_93, %c0_94] : memref<1x32x64xbf16, #tpu.memory_space<vmem>>, vector<1x32x64xbf16>
    %140 = vector.shape_cast %139 : vector<1x32x64xbf16> to vector<32x64xbf16>
    %cst_95 = arith.constant dense<0.000000e+00> : vector<16x64xf32>
    %141 = tpu.matmul %138, %140, %cst_95 {dimension_numbers = #tpu.dot_dimension_numbers<[1], [0], [0], [1], [0, 0, 1, 1], [], []>} : vector<16x32xbf16>, vector<32x64xbf16>, vector<16x64xf32> -> vector<16x64xf32>
    %c0_96 = arith.constant 0 : index
    %c0_97 = arith.constant 0 : index
    %c0_98 = arith.constant 0 : index
    %142 = vector.load %arg16[%c0_96, %c0_97, %c0_98] : memref<1x1x64xf32, #tpu.memory_space<vmem>>, vector<1x1x64xf32>
    %143 = vector.shape_cast %142 : vector<1x1x64xf32> to vector<1x64xf32>
    %144 = vector.broadcast %143 : vector<1x64xf32> to vector<16x64xf32>
    %145 = arith.addf %141, %144 : vector<16x64xf32>
    %146 = arith.mulf %145, %145 : vector<16x64xf32>
    %147 = arith.mulf %145, %146 : vector<16x64xf32>
    %cst_99 = arith.constant 4.471500e-02 : f32
    %148 = vector.broadcast %cst_99 : f32 to vector<16x64xf32>
    %149 = arith.mulf %148, %147 : vector<16x64xf32>
    %150 = arith.addf %145, %149 : vector<16x64xf32>
    %cst_100 = arith.constant 0.797884583 : f32
    %151 = vector.broadcast %cst_100 : f32 to vector<16x64xf32>
    %152 = arith.mulf %151, %150 : vector<16x64xf32>
    %153 = math.tanh %152 : vector<16x64xf32>
    %cst_101 = arith.constant 1.000000e+00 : f32
    %154 = vector.broadcast %cst_101 : f32 to vector<16x64xf32>
    %155 = arith.addf %154, %153 : vector<16x64xf32>
    %cst_102 = arith.constant 5.000000e-01 : f32
    %156 = vector.broadcast %cst_102 : f32 to vector<16x64xf32>
    %157 = arith.mulf %156, %155 : vector<16x64xf32>
    %158 = arith.mulf %145, %157 : vector<16x64xf32>
    %159 = arith.truncf %158 : vector<16x64xf32> to vector<16x64xbf16>
    %c0_103 = arith.constant 0 : index
    %c0_104 = arith.constant 0 : index
    %c0_105 = arith.constant 0 : index
    %160 = vector.load %arg17[%c0_103, %c0_104, %c0_105] : memref<1x64x32xbf16, #tpu.memory_space<vmem>>, vector<1x64x32xbf16>
    %161 = vector.shape_cast %160 : vector<1x64x32xbf16> to vector<64x32xbf16>
    %cst_106 = arith.constant dense<0.000000e+00> : vector<16x32xf32>
    %162 = tpu.matmul %159, %161, %cst_106 {dimension_numbers = #tpu.dot_dimension_numbers<[1], [0], [0], [1], [0, 0, 1, 1], [], []>} : vector<16x64xbf16>, vector<64x32xbf16>, vector<16x32xf32> -> vector<16x32xf32>
    %c0_107 = arith.constant 0 : index
    %c0_108 = arith.constant 0 : index
    %c0_109 = arith.constant 0 : index
    %163 = vector.load %arg18[%c0_107, %c0_108, %c0_109] : memref<1x1x32xf32, #tpu.memory_space<vmem>>, vector<1x1x32xf32>
    %164 = vector.shape_cast %163 : vector<1x1x32xf32> to vector<1x32xf32>
    %165 = vector.broadcast %164 : vector<1x32xf32> to vector<16x32xf32>
    %166 = arith.addf %162, %165 : vector<16x32xf32>
    %167 = arith.addf %137, %166 : vector<16x32xf32>
    %c0_110 = arith.constant 0 : index
    %c0_111 = arith.constant 0 : index
    %c0_112 = arith.constant 0 : index
    %168 = vector.load %arg19[%c0_110, %c0_111, %c0_112] : memref<1x1x32xf32, #tpu.memory_space<vmem>>, vector<1x1x32xf32>
    %169 = vector.shape_cast %168 : vector<1x1x32xf32> to vector<1x32xf32>
    %c0_113 = arith.constant 0 : index
    %c0_114 = arith.constant 0 : index
    %c0_115 = arith.constant 0 : index
    %170 = vector.load %arg20[%c0_113, %c0_114, %c0_115] : memref<1x1x32xf32, #tpu.memory_space<vmem>>, vector<1x1x32xf32>
    %171 = vector.shape_cast %170 : vector<1x1x32xf32> to vector<1x32xf32>
    %cst_116 = arith.constant dense<0.000000e+00> : vector<16xf32>
    %172 = vector.multi_reduction <add>, %167, %cst_116 [1] : vector<16x32xf32> to vector<16xf32>
    %173 = vector.shape_cast %172 : vector<16xf32> to vector<16x1xf32>
    %cst_117 = arith.constant 3.200000e+01 : f32
    %174 = vector.broadcast %cst_117 : f32 to vector<16x1xf32>
    %175 = arith.divf %173, %174 : vector<16x1xf32>
    %176 = vector.broadcast %175 : vector<16x1xf32> to vector<16x32xf32>
    %177 = arith.subf %167, %176 : vector<16x32xf32>
    %178 = arith.mulf %177, %177 : vector<16x32xf32>
    %cst_118 = arith.constant dense<0.000000e+00> : vector<16xf32>
    %179 = vector.multi_reduction <add>, %178, %cst_118 [1] : vector<16x32xf32> to vector<16xf32>
    %180 = vector.shape_cast %179 : vector<16xf32> to vector<16x1xf32>
    %cst_119 = arith.constant 3.200000e+01 : f32
    %181 = vector.broadcast %cst_119 : f32 to vector<16x1xf32>
    %182 = arith.divf %180, %181 : vector<16x1xf32>
    %183 = vector.broadcast %175 : vector<16x1xf32> to vector<16x32xf32>
    %184 = arith.subf %167, %183 : vector<16x32xf32>
    %cst_120 = arith.constant 9.99999974E-6 : f32
    %185 = vector.broadcast %cst_120 : f32 to vector<16x1xf32>
    %186 = arith.addf %182, %185 : vector<16x1xf32>
    %187 = math.rsqrt %186 : vector<16x1xf32>
    %188 = vector.broadcast %187 : vector<16x1xf32> to vector<16x32xf32>
    %189 = arith.mulf %184, %188 : vector<16x32xf32>
    %190 = vector.broadcast %169 : vector<1x32xf32> to vector<16x32xf32>
    %191 = arith.mulf %189, %190 : vector<16x32xf32>
    %192 = vector.broadcast %171 : vector<1x32xf32> to vector<16x32xf32>
    %193 = arith.addf %191, %192 : vector<16x32xf32>
    %c0_121 = arith.constant 0 : index
    %c0_122 = arith.constant 0 : index
    %194 = vector.load %arg24[%c0_121, %c0_122] : memref<16x32xf32, #tpu.memory_space<vmem>>, vector<16x32xf32>
    tpu.vector_store %arg24[%c0_121, %c0_122], %193 {strides = array<i32>} : memref<16x32xf32, #tpu.memory_space<vmem>>, vector<16x32xf32>,
    %c1_i32 = arith.constant 1 : i32
    %195 = arith.cmpi eq, %arg0, %c1_i32 : i32
    %196 = arith.extui %195 : i1 to i32
    %c0_i32_123 = arith.constant 0 : i32
    %197 = arith.cmpi ne, %196, %c0_i32_123 : i32
    scf.if %197 {
      %198 = vector.shape_cast %193 : vector<16x32xf32> to vector<2x8x32xf32>
      %199 = vector.extract_strided_slice %198 {offsets = [0, 0, 0], sizes = [2, 1, 32], strides = [1, 1, 1]} : vector<2x8x32xf32> to vector<2x1x32xf32>
      %200 = vector.shape_cast %199 : vector<2x1x32xf32> to vector<2x32xf32>
      %201 = arith.truncf %200 : vector<2x32xf32> to vector<2x32xbf16>
      %c0_124 = arith.constant 0 : index
      %c0_125 = arith.constant 0 : index
      %202 = vector.load %arg21[%c0_124, %c0_125] : memref<32x32xbf16, #tpu.memory_space<vmem>>, vector<32x32xbf16>
      %cst_126 = arith.constant dense<0.000000e+00> : vector<2x32xf32>
      %203 = tpu.matmul %201, %202, %cst_126 {dimension_numbers = #tpu.dot_dimension_numbers<[1], [0], [0], [1], [0, 0, 1, 1], [], []>} : vector<2x32xbf16>, vector<32x32xbf16>, vector<2x32xf32> -> vector<2x32xf32>
      %c0_127 = arith.constant 0 : index
      %c0_128 = arith.constant 0 : index
      %204 = vector.load %arg22[%c0_127, %c0_128] : memref<1x32xf32, #tpu.memory_space<vmem>>, vector<1x32xf32>
      %205 = vector.broadcast %204 : vector<1x32xf32> to vector<2x32xf32>
      %206 = arith.addf %203, %205 : vector<2x32xf32>
      %207 = math.tanh %206 : vector<2x32xf32>
      %208 = arith.mulf %207, %207 : vector<2x32xf32>
      %cst_129 = arith.constant dense<0.000000e+00> : vector<2xf32>
      %209 = vector.multi_reduction <add>, %208, %cst_129 [1] : vector<2x32xf32> to vector<2xf32>
      %210 = vector.shape_cast %209 : vector<2xf32> to vector<2x1xf32>
      %cst_130 = arith.constant 1.000000e-24 : f32
      %211 = vector.broadcast %cst_130 : f32 to vector<2x1xf32>
      %212 = arith.maximumf %210, %211 : vector<2x1xf32>
      %213 = math.rsqrt %212 : vector<2x1xf32>
      %214 = vector.broadcast %213 : vector<2x1xf32> to vector<2x32xf32>
      %215 = arith.mulf %207, %214 : vector<2x32xf32>
      %c0_131 = arith.constant 0 : index
      %c0_132 = arith.constant 0 : index
      %216 = vector.load %arg23[%c0_131, %c0_132] : memref<2x32xf32, #tpu.memory_space<vmem>>, vector<2x32xf32>
      tpu.vector_store %arg23[%c0_131, %c0_132], %215 {strides = array<i32>} : memref<2x32xf32, #tpu.memory_space<vmem>>, vector<2x32xf32>,
    } else {
    }
    return
  }
  func.func @transform_0(%arg0: i32) -> (i32, i32, i32) {
    %c0_i32 = arith.constant 0 : i32
    %c0_i32_0 = arith.constant 0 : i32
    %c0_i32_1 = arith.constant 0 : i32
    %c0_i32_2 = arith.constant 0 : i32
    return %c0_i32, %c0_i32_0, %c0_i32_1 : i32, i32, i32
  }
  func.func @transform_1(%arg0: i32) -> (i32, i32, i32) {
    %c0_i32 = arith.constant 0 : i32
    %c0_i32_0 = arith.constant 0 : i32
    %c0_i32_1 = arith.constant 0 : i32
    %c0_i32_2 = arith.constant 0 : i32
    return %c0_i32, %c0_i32_0, %c0_i32_1 : i32, i32, i32
  }
  func.func @transform_2(%arg0: i32) -> (i32, i32) {
    %c0_i32 = arith.constant 0 : i32
    %c0_i32_0 = arith.constant 0 : i32
    %c0_i32_1 = arith.constant 0 : i32
    return %c0_i32, %c0_i32_0 : i32, i32
  }
  func.func @transform_3(%arg0: i32) -> (i32, i32) {
    %c0_i32 = arith.constant 0 : i32
    %c0_i32_0 = arith.constant 0 : i32
    %c0_i32_1 = arith.constant 0 : i32
    return %c0_i32, %c0_i32_0 : i32, i32
  }
  func.func @transform_4(%arg0: i32) -> (i32, i32, i32, i32) {
    %c0_i32 = arith.constant 0 : i32
    %c0_i32_0 = arith.constant 0 : i32
    %c0_i32_1 = arith.constant 0 : i32
    %c0_i32_2 = arith.constant 0 : i32
    return %arg0, %c0_i32, %c0_i32_0, %c0_i32_1 : i32, i32, i32, i32
  }
  func.func @transform_5(%arg0: i32) -> (i32, i32, i32, i32) {
    %c0_i32 = arith.constant 0 : i32
    %c0_i32_0 = arith.constant 0 : i32
    %c0_i32_1 = arith.constant 0 : i32
    %c0_i32_2 = arith.constant 0 : i32
    return %arg0, %c0_i32, %c0_i32_0, %c0_i32_1 : i32, i32, i32, i32
  }
  func.func @transform_6(%arg0: i32) -> (i32, i32, i32, i32) {
    %c0_i32 = arith.constant 0 : i32
    %c0_i32_0 = arith.constant 0 : i32
    %c0_i32_1 = arith.constant 0 : i32
    %c0_i32_2 = arith.constant 0 : i32
    return %arg0, %c0_i32, %c0_i32_0, %c0_i32_1 : i32, i32, i32, i32
  }
  func.func @transform_7(%arg0: i32) -> (i32, i32, i32, i32) {
    %c0_i32 = arith.constant 0 : i32
    %c0_i32_0 = arith.constant 0 : i32
    %c0_i32_1 = arith.constant 0 : i32
    %c0_i32_2 = arith.constant 0 : i32
    return %arg0, %c0_i32, %c0_i32_0, %c0_i32_1 : i32, i32, i32, i32
  }
  func.func @transform_8(%arg0: i32) -> (i32, i32, i32, i32) {
    %c0_i32 = arith.constant 0 : i32
    %c0_i32_0 = arith.constant 0 : i32
    %c0_i32_1 = arith.constant 0 : i32
    %c0_i32_2 = arith.constant 0 : i32
    return %arg0, %c0_i32, %c0_i32_0, %c0_i32_1 : i32, i32, i32, i32
  }
  func.func @transform_9(%arg0: i32) -> (i32, i32, i32, i32) {
    %c0_i32 = arith.constant 0 : i32
    %c0_i32_0 = arith.constant 0 : i32
    %c0_i32_1 = arith.constant 0 : i32
    %c0_i32_2 = arith.constant 0 : i32
    return %arg0, %c0_i32, %c0_i32_0, %c0_i32_1 : i32, i32, i32, i32
  }
  func.func @transform_10(%arg0: i32) -> (i32, i32, i32, i32) {
    %c0_i32 = arith.constant 0 : i32
    %c0_i32_0 = arith.constant 0 : i32
    %c0_i32_1 = arith.constant 0 : i32
    %c0_i32_2 = arith.constant 0 : i32
    return %arg0, %c0_i32, %c0_i32_0, %c0_i32_1 : i32, i32, i32, i32
  }
  func.func @transform_11(%arg0: i32) -> (i32, i32, i32) {
    %c0_i32 = arith.constant 0 : i32
    %c0_i32_0 = arith.constant 0 : i32
    %c0_i32_1 = arith.constant 0 : i32
    return %arg0, %c0_i32, %c0_i32_0 : i32, i32, i32
  }
  func.func @transform_12(%arg0: i32) -> (i32, i32, i32) {
    %c0_i32 = arith.constant 0 : i32
    %c0_i32_0 = arith.constant 0 : i32
    %c0_i32_1 = arith.constant 0 : i32
    return %arg0, %c0_i32, %c0_i32_0 : i32, i32, i32
  }
  func.func @transform_13(%arg0: i32) -> (i32, i32, i32) {
    %c0_i32 = arith.constant 0 : i32
    %c0_i32_0 = arith.constant 0 : i32
    %c0_i32_1 = arith.constant 0 : i32
    return %arg0, %c0_i32, %c0_i32_0 : i32, i32, i32
  }
  func.func @transform_14(%arg0: i32) -> (i32, i32, i32) {
    %c0_i32 = arith.constant 0 : i32
    %c0_i32_0 = arith.constant 0 : i32
    %c0_i32_1 = arith.constant 0 : i32
    return %arg0, %c0_i32, %c0_i32_0 : i32, i32, i32
  }
  func.func @transform_15(%arg0: i32) -> (i32, i32, i32) {
    %c0_i32 = arith.constant 0 : i32
    %c0_i32_0 = arith.constant 0 : i32
    %c0_i32_1 = arith.constant 0 : i32
    return %arg0, %c0_i32, %c0_i32_0 : i32, i32, i32
  }
  func.func @transform_16(%arg0: i32) -> (i32, i32, i32) {
    %c0_i32 = arith.constant 0 : i32
    %c0_i32_0 = arith.constant 0 : i32
    %c0_i32_1 = arith.constant 0 : i32
    return %arg0, %c0_i32, %c0_i32_0 : i32, i32, i32
  }
  func.func @transform_17(%arg0: i32) -> (i32, i32, i32) {
    %c0_i32 = arith.constant 0 : i32
    %c0_i32_0 = arith.constant 0 : i32
    %c0_i32_1 = arith.constant 0 : i32
    return %arg0, %c0_i32, %c0_i32_0 : i32, i32, i32
  }
  func.func @transform_18(%arg0: i32) -> (i32, i32, i32) {
    %c0_i32 = arith.constant 0 : i32
    %c0_i32_0 = arith.constant 0 : i32
    %c0_i32_1 = arith.constant 0 : i32
    return %arg0, %c0_i32, %c0_i32_0 : i32, i32, i32
  }
  func.func @transform_19(%arg0: i32) -> (i32, i32, i32) {
    %c0_i32 = arith.constant 0 : i32
    %c0_i32_0 = arith.constant 0 : i32
    %c0_i32_1 = arith.constant 0 : i32
    return %arg0, %c0_i32, %c0_i32_0 : i32, i32, i32
  }
  func.func @transform_20(%arg0: i32) -> (i32, i32) {
    %c0_i32 = arith.constant 0 : i32
    %c0_i32_0 = arith.constant 0 : i32
    %c0_i32_1 = arith.constant 0 : i32
    return %c0_i32, %c0_i32_0 : i32, i32
  }
  func.func @transform_21(%arg0: i32) -> (i32, i32) {
    %c0_i32 = arith.constant 0 : i32
    %c0_i32_0 = arith.constant 0 : i32
    %c0_i32_1 = arith.constant 0 : i32
    return %c0_i32, %c0_i32_0 : i32, i32
  }
  func.func @transform_22(%arg0: i32) -> (i32, i32) {
    %c0_i32 = arith.constant 0 : i32
    %c0_i32_0 = arith.constant 0 : i32
    %c0_i32_1 = arith.constant 0 : i32
    return %c0_i32, %c0_i32_0 : i32, i32
  }
}

</mosaic_0001>

<bundles_post_ra>
// kernel: codebert_forward.1
= control target key start
LH: loop header
LB: loop body
LE: loop exit
PB: predicated region body
PF: predicated region fallthrough
CT: control target
= control target key end

     0   :  { %s3368_s0 = inlined_call_operand.vmem [shape: f32[2,8,32], index: 0, kind: input, shape index: {}]   ;;  %s3369_s1 = inlined_call_operand.vmem [shape: f32[2,1,8], index: 1, kind: input, shape index: {}]   ;;  %s3370_s2 = inlined_call_operand.vmem [shape: f32[1,32], index: 2, kind: input, shape index: {}]   ;;  %s3371_s3 = inlined_call_operand.vmem [shape: f32[1,32], index: 3, kind: input, shape index: {}]   ;;  %s3372_s4 = inlined_call_operand.vmem [shape: bf16[2,2,32,16], index: 4, kind: input, shape index: {}]   ;;  %s3373_s5 = inlined_call_operand.vmem [shape: f32[2,2,1,16], index: 5, kind: input, shape index: {}]   ;;  %s3374_s6 = inlined_call_operand.vmem [shape: bf16[2,2,32,16], index: 6, kind: input, shape index: {}]   ;;  %s3375_s7 = inlined_call_operand.vmem [shape: f32[2,2,1,16], index: 7, kind: input, shape index: {}]   ;;  %s3376_s8 = inlined_call_operand.vmem [shape: bf16[2,2,32,16], index: 8, kind: input, shape index: {}]   ;;  %s3377_s9 = inlined_call_operand.vmem [shape: f32[2,2,1,16], index: 9, kind: input, shape index: {}]   ;;  %s3378_s10 = inlined_call_operand.vmem [shape: bf16[2,2,16,32], index: 10, kind: input, shape index: {}]   ;;  %s3379_s11 = inlined_call_operand.vmem [shape: f32[2,1,32], index: 11, kind: input, shape index: {}]   ;;  %s3380_s12 = inlined_call_operand.vmem [shape: f32[2,1,32], index: 12, kind: input, shape index: {}]   ;;  %s3381_s13 = inlined_call_operand.vmem [shape: f32[2,1,32], index: 13, kind: input, shape index: {}]   ;;  %s3382_s14 = inlined_call_operand.vmem [shape: bf16[2,32,64], index: 14, kind: input, shape index: {}]   ;;  %s3383_s15 = inlined_call_operand.vmem [shape: f32[2,1,64], index: 15, kind: input, shape index: {}]   ;;  %s3384_s16 = inlined_call_operand.vmem [shape: bf16[2,64,32], index: 16, kind: input, shape index: {}]   ;;  %s3385_s17 = inlined_call_operand.vmem [shape: f32[2,1,32], index: 17, kind: input, shape index: {}]   ;;  %s3386_s18 = inlined_call_operand.vmem [shape: f32[2,1,32], index: 18, kind: input, shape index: {}]   ;;  %s3387_s19 = inlined_call_operand.vmem [shape: f32[2,1,32], index: 19, kind: input, shape index: {}]   ;;  %s3388_s20 = inlined_call_operand.vmem [shape: bf16[32,32], index: 20, kind: input, shape index: {}]   ;;  %s3389_s21 = inlined_call_operand.vmem [shape: f32[1,32], index: 21, kind: input, shape index: {}]   ;;  %s3390_s22 = inlined_call_operand.hbm [shape: f32[2,32], index: 22, kind: output, shape index: {}]  }
   0x1   :  { %3400 = sst [smem:[#allocation11_spill]] %s3368_s0 }
   0x2   :  { %3401 = sst [smem:[#allocation12_spill]] %s3369_s1 }
   0x3   :  { %3402 = sst [smem:[#allocation13_spill]] %s3370_s2 }
   0x4   :  { %3403 = sst [smem:[#allocation14_spill]] %s3371_s3 }
   0x5   :  { %3404 = sst [smem:[#allocation15_spill]] %s3372_s4 }
   0x6   :  { %3405 = sst [smem:[#allocation16_spill]] %s3373_s5 }
   0x7   :  { %3406 = sst [smem:[#allocation17_spill]] %s3374_s6 }
   0x8   :  { %3407 = sst [smem:[#allocation18_spill]] %s3375_s7 }
   0x9   :  { %3408 = sst [smem:[#allocation19_spill]] %s3376_s8 }
   0xa   :  { %3409 = sst [smem:[#allocation20_spill]] %s3377_s9 }
   0xb   :  { %3410 = sst [smem:[#allocation21_spill]] %s3378_s10 }
   0xc   :  { %3411 = sst [smem:[#allocation22_spill]] %s3382_s14 }
   0xd   :  { %3412 = sst [smem:[#allocation23_spill]] %s3388_s20 }
   0xe   :  { %3413 = sst [smem:[#allocation24_spill]] %s3389_s21 }
   0xf   :  { %3414 = sst [smem:[#allocation25_spill]] %s3390_s22 }
  0x10   :  { %27 = vsyncpa [#allocation4], 0  ;;  %s3026_s3 = smov 0  }
  0x11 LB: > { %3415 = sst [smem:[#allocation6_spill]] %s2904_s3  ;;  %s3032_s28 = sadd.s32 4294967295, %s2904_s3   ;;  %s2904_s3 = sphi %s3026_s3, %s33_s3  }
  0x12   : > { %3416 = sst [smem:[#allocation7_spill]] %s3032_s28  ;;  %p2504_p0 = scmp.ge.s32.totalorder %s2904_s3, 1 }
  0x13   : > { %p741_p1 = scmp.lt.s32.totalorder %s2904_s3, 3 }
  0x15   : > { %p742_p2 = pnand %p2504_p0, %p741_p1 }
  0x17   : > { %745 = sbr.rel (%p742_p2) target bundleno = 3686 (0xe66), region = 108 }
  0x1c   : > { %p856_p3 = scmp.lt.s32.totalorder %s3032_s28, 1  ;;  %s3417_s1 = sld [smem:[#allocation15_spill]] }
  0x1d   : > { %s3419_s25 = sld [smem:[#allocation16_spill]] }
  0x1e   : > { %s3038_s29 = scalar_select %p856_p3, %s3032_s28, 1 }
  0x1f   : > { %s3421_s3 = sld [smem:[#allocation17_spill]] }
  0x20   : > { %s2602_s30 = sshll.u32 %s3038_s29, 5  ;;  %s2507_s4 = sshll.u32 %s3038_s29, 1 }
  0x21   : > { %s3423_s7 = sld [smem:[#allocation18_spill]]  ;;  %s912_s0 = scalar_lea.vmem %s3385_s17, %s3038_s29 }
  0x22   : > { %s3045_s5 = scalar_lea.vmem %s3417_s1, %s2602_s30  ;;  %s3424_s8 = sld [smem:[#allocation19_spill]] }
  0x23   : > { %3418 = sst [smem:[#allocation8_spill]] %s3045_s5  ;;  %s3050_s26 = scalar_lea.vmem %s3419_s25, %s2507_s4 }
  0x24   : > { %3420 = sst [smem:[#allocation9_spill]] %s3050_s26  ;;  %s2605_s25 = sshll.u32 %s3038_s29, 4 }
  0x25   : > { %s3055_s22 = scalar_lea.vmem %s3421_s3, %s2602_s30  ;;  %s3425_s9 = sld [smem:[#allocation20_spill]] }
  0x26   : > { %3422 = sst [smem:[#allocation10_spill]] %s3055_s22  ;;  %s904_s3 = scalar_lea.vmem %s3383_s15, %s3038_s29 }
  0x27   : > { %s3060_s28 = scalar_lea.vmem %s3423_s7, %s2507_s4  ;;  %s3426_s10 = sld [smem:[#allocation21_spill]] }
  0x28   : > { %s3065_s1 = scalar_lea.vmem %s3424_s8, %s2602_s30  ;;  %s3427_s14 = sld [smem:[#allocation22_spill]] }
  0x29   : > { %s915_s5 = scalar_lea.vmem %s3386_s18, %s3038_s29  ;;  %s918_s24 = scalar_lea.vmem %s3387_s19, %s3038_s29 }
  0x2b   : > { %s3070_s6 = scalar_lea.vmem %s3425_s9, %s2507_s4 }
  0x2d   : > { %s3080_s20 = scalar_lea.vmem %s3426_s10, %s2605_s25  ;;  %s3102_s10 = scalar_lea.vmem %s3384_s16, %s2602_s30 }
  0x2e   : > { %s3093_s9 = scalar_lea.vmem %s3427_s14, %s2605_s25  ;;  %s3428_s14 = sld [smem:[#allocation7_spill]] }
  0x34   : > { %p2520_p4 = scmp.ne.s32.totalorder %s3428_s14, 0 }
  0x35   : > { %s3429_s22 = sld [smem:[#allocation11_spill]] (!%p2520_p4) }
  0x36   : > { %923 = sbr.rel (%p2520_p4) target bundleno = 373 (0x175), region = 112  ;;  %s3430_s21 = sld [smem:[#allocation13_spill]] (!%p2520_p4) }
  0x37   : > { %s3431_s4 = sld [smem:[#allocation14_spill]] (!%p2520_p4) }
  0x3b   : > { %v924_v0 = vld [vmem:[%s3429_s22] sm:$0xff]  ;;  %vm928_vm0 = vcmask 261120   ;;  %v925_v1 = vld [vmem:[%s3429_s22 + $0x8] sm:$0xff] }
  0x3c   : > { %v929_v2 = vsel %vm928_vm0, %v924_v0, 0.0  ;;  %v932_v3 = vsel %vm928_vm0, %v925_v1, 0.0  ;;  %v2521_v21 = vld [vmem:[%s3430_s21] ss:$0 sm:$0xff] }
  0x3d   : > { %930 = vadd.xlane.f32.xlu0 %v929_v2  ;;  %v2522_v23 = vld [vmem:[%s3431_s4] ss:$0 sm:$0xff] }
  0x41   : > { %933 = vadd.xlane.f32.xlu0 %v932_v3 }
  0xc6   : > { %v931_v4 = vpop.xlane.xlu0 %930 }
  0xc7   : > { %v936_v5 = vmul.f32 0.03125, %v931_v4 }
  0xc9   : > { %v938_v6 = vsub.f32 %v924_v0, %v936_v5 }
  0xca   : > { %v934_v7 = vpop.xlane.xlu0 %933 }
  0xcb   : > { %v937_v8 = vmul.f32 0.03125, %v934_v7  ;;  %v940_v9 = vmul.f32 %v938_v6, %v938_v6 }
  0xcd   : > { %v939_v10 = vsub.f32 %v925_v1, %v937_v8  ;;  %v942_v11 = vsel %vm928_vm0, %v940_v9, 0.0 }
  0xce   : > { %943 = vadd.xlane.f32.xlu1 %v942_v11 }
  0xcf   : > { %v941_v12 = vmul.f32 %v939_v10, %v939_v10 }
  0xd1   : > { %v945_v13 = vsel %vm928_vm0, %v941_v12, 0.0 }
  0xd2   : > { %946 = vadd.xlane.f32.xlu1 %v945_v13 }
 0x157   : > { %v944_v14 = vpop.xlane.xlu1 %943 }
 0x158   : > { %v948_v15 = vmul.f32 0.03125, %v944_v14 }
 0x15a   : > { %v950_v16 = vadd.f32 1e-05, %v948_v15 }
 0x15b   : > { %v947_v17 = vpop.xlane.xlu1 %946 }
 0x15c   : > { %2812 = vrsqrt.f32 %v950_v16  ;;  %v949_v18 = vmul.f32 0.03125, %v947_v17 }
 0x15e   : > { %v951_v19 = vadd.f32 1e-05, %v949_v18 }
 0x160   : > { %2814 = vrsqrt.f32 %v951_v19 }
 0x169   : > { %v2813_v20 = vpop.eup %2812 }
 0x16a   : > { %v954_v22 = vmul.f32 %v2813_v20, %v938_v6 }
 0x16c   : > { %v962_v24 = vmul.f32 %v2521_v21, %v954_v22 }
 0x16d   : > { %v2815_v25 = vpop.eup %2814 }
 0x16e   : > { %v970_v26 = vadd.f32 %v2522_v23, %v962_v24  ;;  %v955_v27 = vmul.f32 %v2815_v25, %v939_v10 }
 0x170   : > { %972 = vst.msk [vmem:[#allocation2] sm:$0xff] %vm928_vm0, %v970_v26  ;;  %v963_v28 = vmul.f32 %v2521_v21, %v955_v27 }
 0x172   : > { %v971_v29 = vadd.f32 %v2522_v23, %v963_v28 }
 0x174   : > { %973 = vst.msk [vmem:[#allocation2 + $0x8] sm:$0xff] %vm928_vm0, %v971_v29 }
 0x175 PF: > { %s3432_s25 = sld [smem:[#allocation10_spill]]  ;;  %v2906_v31 = vmov 0.0   ;;  %vm2907_vm1 = vmmov 0   ;;  %vm1002_vm2 = vcmask 261120   ;;  %v2820_v38 = vld [vmem:[%s3065_s1 + $0x8] sm:$0xff]   ;;  %v2821_v39 = vld [vmem:[%s3065_s1] sm:$0xff]  }
 0x176   : > { %s3433_s26 = sld [smem:[#allocation8_spill]]  ;;  %2665 = vmatprep.subr.bf16.mxu1 %v2906_v31  ;;  %2657 = vmatprep.subr.bf16.mxu0 %v2906_v31  ;;  %v2527_v40 = vld [vmem:[%s3060_s28] ss:$0 sm:$0xff]  ;;  %vm1181_vm3 = vcmask 130048   ;;  %vm1318_vm4 = vcmask 1043456   ;;  %vm1290_vm5 = vcmask 64512  }
 0x177   : > { %2669 = vmatprep.mubr.msk.bf16.mxu1 %vm2907_vm1, %v2906_v31  ;;  %v3145_v35 = vld [vmem:[#allocation2] sm:$0xff]  ;;  %2661 = vmatprep.mubr.msk.bf16.mxu0 %vm2907_vm1, %v2906_v31  ;;  %s3434_s2 = sld [smem:[#allocation9_spill]]  ;;  %vm2113_vm6 = vcmask 523264  }
 0x178   : > { %v2531_v60 = vld [vmem:[%s3070_s6] ss:$0 sm:$0xff]  ;;  %s3435_s14 = sld [smem:[#allocation12_spill]] }
 0x179   : > { %s3439_s21 = sld [smem:[#allocation7_spill]] }
 0x17b   : > { %v2816_v30 = vld [vmem:[%s3432_s25 + $0x8] sm:$0xff]   ;;  %v2818_v33 = vld [vmem:[%s3432_s25] sm:$0xff]  }
 0x17c   : > { %v2817_v32 = vld [vmem:[%s3433_s26 + $0x8] sm:$0xff]   ;;  %2666 = vmatpush3.bf16.msra.mxu1 %v2816_v30  ;;  %v2819_v34 = vld [vmem:[%s3433_s26] sm:$0xff]  }
 0x17d   : > { %2658 = vmatpush3.bf16.msra.mxu0 %v2817_v32  ;;  %2667 = vmatprep.subr.bf16.mxu1 %v2906_v31  ;;  %v3147_v36 = vld [vmem:[#allocation2 + $0x8] sm:$0xff]  ;;  %v2523_v44 = vld [vmem:[%s3434_s2] ss:$0 sm:$0xff] }
 0x17e   : > { %2659 = vmatprep.subr.bf16.mxu0 %v2906_v31  ;;  %v3153_v37 = vpack.c.bf16 %v3147_v36, %v3145_v35  ;;  %v3193_v11 = vld [vmem:[%s3435_s14 + $0x1] ss:$0 sm:$0xff]  ;;  %v3198_v16 = vld [vmem:[%s3435_s14] ss:$0 sm:$0xff] }
 0x17f   : > { %p2593_p5 = scmp.ne.s32.totalorder %s3439_s21, 1 }
 0x180   : > { %2668 = vmatpush3.bf16.msra.mxu1 %v2818_v33  ;;  %s3441_s8 = sld [smem:[#allocation24_spill]] (!%p2593_p5) }
 0x181   : > { %2660 = vmatpush3.bf16.msra.mxu0 %v2819_v34  ;;  %2681 = vmatprep.subr.bf16.mxu1 %v2906_v31 }
 0x182   : > { %2673 = vmatprep.subr.bf16.mxu0 %v2906_v31 }
 0x183   : > { %2670 = vmatmul.mubr.msk.bf16.vlgmr.msra.gmra.mxu1 %vm1002_vm2, %v3153_v37 }
 0x184   : > { %2662 = vmatmul.mubr.msk.bf16.vlgmr.msra.gmra.mxu0 %vm1002_vm2, %v3153_v37  ;;  %2683 = vmatprep.mubr.msk.bf16.mxu1 %vm2907_vm1, %v2906_v31 }
 0x185   : > { %2674 = vmatpush3.bf16.msra.mxu0 %v2820_v38  ;;  %2677 = vmatprep.mubr.msk.bf16.mxu0 %vm2907_vm1, %v2906_v31 }
 0x186   : > { %2675 = vmatprep.subr.bf16.mxu0 %v2906_v31 }
 0x189   : > { %2676 = vmatpush3.bf16.msra.mxu0 %v2821_v39 }
 0x18a   : > { %2687 = vmatprep.subr.bf16.mxu0 %v2906_v31 }
 0x18c   : > { %2678 = vmatmul.mubr.msk.bf16.vlgmr.msra.gmra.mxu0 %vm1002_vm2, %v3153_v37 }
 0x18d   : > { %2689 = vmatprep.mubr.msk.bf16.mxu0 %vm2907_vm1, %v2906_v31 }
 0x243   : > { %v1104_v41 = vpop.f32.mrf.mxu1 }
 0x244   : > { %v1105_v42 = vadd.f32 %v2527_v40, %v1104_v41  ;;  %v1040_v43 = vpop.f32.mrf.mxu0  ;;  %v2822_v41 = vld [vmem:[%s3432_s25 + $0x18] sm:$0xff]  }
 0x245   : > { %v2671_v45 = vpop.f32.mrf.mxu1  ;;  %v1041_v50 = vadd.f32 %v2523_v44, %v1040_v43 }
 0x246   : > { %v1177_v46 = vpack.c.bf16 %v1105_v42, %v1105_v42  ;;  %v2663_v47 = vpop.f32.mrf.mxu0  ;;  %v2823_v45 = vld [vmem:[%s3433_s26 + $0x18] sm:$0xff]  }
 0x247   : > { %v1107_v48 = vpop.f32.mrf.mxu1  ;;  %v1175_v56 = vpack.c.bf16 %v1041_v50, %v1041_v50  ;;  %v2827_v50 = vld [vmem:[%s3065_s1 + $0x10] sm:$0xff]  }
 0x248   : > { %v1186_v49 = vsel %vm1181_vm3, %v1177_v46, 0  ;;  %v1108_v51 = vadd.f32 %v2527_v40, %v1107_v48  ;;  %v1043_v52 = vpop.f32.mrf.mxu0  ;;  %v2824_v46 = vld [vmem:[%s3432_s25 + $0x10] sm:$0xff]   ;;  %s3438_s25 = scalar_lea.vmem %s3381_s13, %s3038_s29 }
 0x249   : > { %v2672_v53 = vpop.f32.mrf.mxu1  ;;  %2682 = vmatpush3.bf16.xpose.msra.mxu1 %v1186_v49  ;;  %v1044_v58 = vadd.f32 %v2523_v44, %v1043_v52  ;;  %v2825_v48 = vld [vmem:[%s3433_s26 + $0x10] sm:$0xff]   ;;  %v2826_v49 = vld [vmem:[%s3065_s1 + $0x18] sm:$0xff]   ;;  %s3440_s1 = sld [smem:[#allocation23_spill]] (!%p2593_p5) }
 0x24a   : > { %v1178_v54 = vpack.c.bf16 %v1108_v51, %v1108_v51  ;;  %v2664_v55 = vpop.f32.mrf.mxu0  ;;  %2693 = vmatprep.subr.bf16.mxu1 %v2906_v31 }
 0x24b   : > { %v1176_v59 = vpack.c.bf16 %v1044_v58, %v1044_v58  ;;  %v2555_v58 = vld [vmem:[%s3060_s28 + $0x1] ss:$0 sm:$0xff] }
 0x24c   : > { %v1232_v57 = vsel %vm1181_vm3, %v1178_v54, 0  ;;  %v1168_v61 = vpop.f32.mrf.mxu0 }
 0x24d   : > { %2688 = vmatpush3.bf16.xpose.msra.mxu0 %v1232_v57  ;;  %v1169_v62 = vadd.f32 %v2531_v60, %v1168_v61 }
 0x24e   : > { %2699 = vmatprep.subr.bf16.mxu0 %v2906_v31  ;;  %v2679_v63 = vpop.f32.mrf.mxu0 }
 0x24f   : > { %v1179_v0 = vpack.c.bf16 %v1169_v62, %v1169_v62  ;;  %v2546_v63 = vld [vmem:[%s3434_s2 + $0x1] ss:$0 sm:$0xff] }
 0x250   : > { %2684 = vmatmul.mubr.msk.bf16.vlgmr.msra.gmra.mxu1 %vm1181_vm3, %v1175_v56  ;;  %v1171_v1 = vpop.f32.mrf.mxu0 }
 0x251   : > { %2695 = vmatprep.mubr.msk.bf16.mxu1 %vm2907_vm1, %v2906_v31  ;;  %v1320_v2 = vsel %vm1318_vm4, %v1179_v0, 0  ;;  %v1172_v3 = vadd.f32 %v2531_v60, %v1171_v1 }
 0x252   : > { %v2680_v4 = vpop.f32.mrf.mxu0  ;;  %2694 = vmatpush3.bf16.msra.mxu1 %v1320_v2 }
 0x253   : > { %v1180_v5 = vpack.c.bf16 %v1172_v3, %v1172_v3  ;;  %2705 = vmatprep.subr.bf16.mxu1 %v2906_v31 }
 0x254   : > { %2690 = vmatmul.mubr.msk.bf16.vlgmr.msra.gmra.mxu0 %vm1181_vm3, %v1176_v59 }
 0x255   : > { %2701 = vmatprep.mubr.msk.bf16.mxu0 %vm2907_vm1, %v2906_v31  ;;  %v1366_v6 = vsel %vm1318_vm4, %v1180_v5, 0 }
 0x256   : > { %2700 = vmatpush3.bf16.msra.mxu0 %v1366_v6 }
 0x257   : > { %2713 = vmatprep.subr.bf16.mxu0 %v2906_v31 }
 0x310   : > { %v1222_v7 = vpop.f32.mrf.mxu1 }
 0x311   : > { %v1274_v12 = vmul.f32 0.25, %v1222_v7 }
 0x312   : > { %v2685_v8 = vpop.f32.mrf.mxu1 }
 0x313   : > { %v1288_v20 = vadd.f32 %v3198_v16, %v1274_v12 }
 0x314   : > { %v1225_v9 = vpop.f32.mrf.mxu1  ;;  %v1268_v10 = vpop.f32.mrf.mxu0 }
 0x315   : > { %v1275_v13 = vmul.f32 0.25, %v1268_v10  ;;  %v1291_v22 = vsel %vm1290_vm5, %v1288_v20, -inf }
 0x316   : > { %v2686_v14 = vpop.f32.mrf.mxu1  ;;  %v2691_v15 = vpop.f32.mrf.mxu0 }
 0x317   : > { %v1289_v17 = vadd.f32 %v3193_v11, %v1275_v13 }
 0x318   : > { %v1271_v18 = vpop.f32.mrf.mxu0 }
 0x319   : > { %v1294_v19 = vsel %vm1290_vm5, %v1289_v17, -inf }
 0x31a   : > { %1295 = vmax.xlane.f32.xlu0 %v1294_v19  ;;  %v2692_v21 = vpop.f32.mrf.mxu0 }
 0x31e   : > { %1292 = vmax.xlane.f32.xlu0 %v1291_v22 }
 0x3a3   : > { %v1296_v23 = vpop.xlane.xlu0 %1295 }
 0x3a4   : > { %v1298_v24 = vsub.f32 %v1289_v17, %v1296_v23  ;;  %v2564_v17 = vld [vmem:[%s3070_s6 + $0x1] ss:$0 sm:$0xff]  ;;  %s3436_s6 = scalar_lea.vmem %s3379_s11, %s3038_s29 }
 0x3a6   : > { %v1301_v25 = vmul.f32 1.442695, %v1298_v24 }
 0x3a7   : > { %v1293_v26 = vpop.xlane.xlu0 %1292 }
 0x3a8   : > { %2836 = vpow2.f32 %v1301_v25  ;;  %v1297_v27 = vsub.f32 %v1288_v20, %v1293_v26 }
 0x3aa   : > { %v1299_v28 = vmul.f32 1.442695, %v1297_v27 }
 0x3ac   : > { %2838 = vpow2.f32 %v1299_v28 }
 0x3b5   : > { %v2837_v29 = vpop.eup %2836 }
 0x3b6   : > { %v1306_v30 = vsel %vm1290_vm5, %v2837_v29, 0.0 }
 0x3b7   : > { %1307 = vadd.xlane.f32.xlu1 %v1306_v30 }
 0x3b9   : > { %v2839_v32 = vpop.eup %2838 }
 0x3ba   : > { %v1303_v33 = vsel %vm1290_vm5, %v2839_v32, 0.0 }
 0x3bb   : > { %1304 = vadd.xlane.f32.xlu1 %v1303_v33 }
 0x440   : > { %v1308_v34 = vpop.xlane.xlu1 %1307 }
 0x441   : > { %2840 = vrcp.f32 %v1308_v34 }
 0x444   : > { %v1305_v38 = vpop.xlane.xlu1 %1304 }
 0x445   : > { %2842 = vrcp.f32 %v1305_v38 }
 0x44e   : > { %v2841_v39 = vpop.eup %2840 }
 0x44f   : > { %v1312_v40 = vmul.f32 %v2841_v39, %v2837_v29 }
 0x451   : > { %v1314_v42 = vpack.c.bf16 %v1312_v40, %v1312_v40 }
 0x452   : > { %v2843_v43 = vpop.eup %2842 }
 0x453   : > { %2702 = vmatmul.mubr.msk.bf16.vlgmr.msra.gmra.mxu0 %vm1290_vm5, %v1314_v42  ;;  %v1311_v44 = vmul.f32 %v2843_v43, %v2839_v32 }
 0x454   : > { %2714 = vmatpush3.bf16.msra.mxu0 %v2822_v41  ;;  %2717 = vmatprep.mubr.msk.bf16.mxu0 %vm2907_vm1, %v2906_v31 }
 0x455   : > { %v1313_v47 = vpack.c.bf16 %v1311_v44, %v1311_v44  ;;  %2715 = vmatprep.subr.bf16.mxu0 %v2906_v31 }
 0x457   : > { %2696 = vmatmul.mubr.msk.bf16.vlgmr.msra.gmra.mxu1 %vm1290_vm5, %v1313_v47 }
 0x458   : > { %2706 = vmatpush3.bf16.msra.mxu1 %v2823_v45  ;;  %2716 = vmatpush3.bf16.msra.mxu0 %v2824_v46 }
 0x459   : > { %2707 = vmatprep.subr.bf16.mxu1 %v2906_v31  ;;  %2709 = vmatprep.mubr.msk.bf16.mxu1 %vm2907_vm1, %v2906_v31 }
 0x45a   : > { %2729 = vmatprep.subr.bf16.mxu0 %v2906_v31 }
 0x45b   : > { %2718 = vmatmul.mubr.msk.bf16.vlgmr.msra.gmra.mxu0 %vm1002_vm2, %v3153_v37 }
 0x45c   : > { %2708 = vmatpush3.bf16.msra.mxu1 %v2825_v48  ;;  %2731 = vmatprep.mubr.msk.bf16.mxu0 %vm2907_vm1, %v2906_v31 }
 0x45d   : > { %2721 = vmatprep.subr.bf16.mxu1 %v2906_v31 }
 0x45f   : > { %2710 = vmatmul.mubr.msk.bf16.vlgmr.msra.gmra.mxu1 %vm1002_vm2, %v3153_v37 }
 0x460   : > { %2725 = vmatprep.mubr.msk.bf16.mxu1 %vm2907_vm1, %v2906_v31  ;;  %2722 = vmatpush3.bf16.msra.mxu1 %v2826_v49 }
 0x461   : > { %2723 = vmatprep.subr.bf16.mxu1 %v2906_v31 }
 0x464   : > { %2724 = vmatpush3.bf16.msra.mxu1 %v2827_v50 }
 0x465   : > { %2735 = vmatprep.subr.bf16.mxu1 %v2906_v31 }
 0x467   : > { %2726 = vmatmul.mubr.msk.bf16.vlgmr.msra.gmra.mxu1 %vm1002_vm2, %v3153_v37 }
 0x468   : > { %2737 = vmatprep.mubr.msk.bf16.mxu1 %vm2907_vm1, %v2906_v31 }
 0x513   : > { %v3236_v51 = vpop.f32.mrf.mxu0 }
 0x515   : > { %v2703_v52 = vpop.f32.mrf.mxu0 }
 0x517   : > { %v3238_v53 = vpop.f32.mrf.mxu1  ;;  %v1405_v54 = vpop.f32.mrf.mxu0 }
 0x518   : > { %v1408_v55 = vpack.c.bf16 %v3236_v51, %v3238_v53 }
 0x519   : > { %v2697_v56 = vpop.f32.mrf.mxu1  ;;  %v2704_v57 = vpop.f32.mrf.mxu0 }
 0x51b   : > { %v1359_v59 = vpop.f32.mrf.mxu1  ;;  %v1536_v60 = vpop.f32.mrf.mxu0 }
 0x51c   : > { %v1537_v61 = vadd.f32 %v2555_v58, %v1536_v60 }
 0x51d   : > { %v2698_v62 = vpop.f32.mrf.mxu1  ;;  %v2719_v37 = vpop.f32.mrf.mxu0 }
 0x51e   : > { %v1611_v0 = vpack.c.bf16 %v1537_v61, %v1537_v61 }
 0x51f   : > { %v1470_v1 = vpop.f32.mrf.mxu1  ;;  %v1539_v2 = vpop.f32.mrf.mxu0 }
 0x520   : > { %v1619_v3 = vsel %vm1181_vm3, %v1611_v0, 0  ;;  %v1471_v4 = vadd.f32 %v2546_v63, %v1470_v1  ;;  %v1540_v5 = vadd.f32 %v2555_v58, %v1539_v2  ;;  %v2829_v1 = vld [vmem:[%s3080_s20 + $0x8] sm:$0xff]  }
 0x521   : > { %v2711_v6 = vpop.f32.mrf.mxu1  ;;  %v2720_v7 = vpop.f32.mrf.mxu0  ;;  %2730 = vmatpush3.bf16.xpose.msra.mxu0 %v1619_v3 }
 0x522   : > { %v1612_v8 = vpack.c.bf16 %v1540_v5, %v1540_v5  ;;  %2741 = vmatprep.subr.bf16.mxu0 %v2906_v31  ;;  %v1609_v10 = vpack.c.bf16 %v1471_v4, %v1471_v4 }
 0x523   : > { %v1473_v9 = vpop.f32.mrf.mxu1 }
 0x524   : > { %v1665_v12 = vsel %vm1181_vm3, %v1612_v8, 0  ;;  %v1474_v14 = vadd.f32 %v2546_v63, %v1473_v9  ;;  %v2828_v63 = vld [vmem:[%s3080_s20] sm:$0xff]  }
 0x525   : > { %v2712_v13 = vpop.f32.mrf.mxu1  ;;  %2736 = vmatpush3.bf16.xpose.msra.mxu1 %v1665_v12 }
 0x526   : > { %2747 = vmatprep.subr.bf16.mxu1 %v2906_v31  ;;  %v1610_v15 = vpack.c.bf16 %v1474_v14, %v1474_v14 }
 0x527   : > { %v1602_v18 = vpop.f32.mrf.mxu1 }
 0x528   : > { %2732 = vmatmul.mubr.msk.bf16.vlgmr.msra.gmra.mxu0 %vm1181_vm3, %v1609_v10  ;;  %v1603_v19 = vadd.f32 %v2564_v17, %v1602_v18 }
 0x529   : > { %2743 = vmatprep.mubr.msk.bf16.mxu0 %vm2907_vm1, %v2906_v31  ;;  %v2727_v20 = vpop.f32.mrf.mxu1 }
 0x52a   : > { %v1613_v21 = vpack.c.bf16 %v1603_v19, %v1603_v19 }
 0x52b   : > { %v1605_v22 = vpop.f32.mrf.mxu1 }
 0x52c   : > { %2738 = vmatmul.mubr.msk.bf16.vlgmr.msra.gmra.mxu1 %vm1181_vm3, %v1610_v15  ;;  %v1739_v23 = vsel %vm1318_vm4, %v1613_v21, 0  ;;  %v1606_v24 = vadd.f32 %v2564_v17, %v1605_v22  ;;  %v2578_v17 = vld [vmem:[%s3436_s6] ss:$0 sm:$0xff] }
 0x52d   : > { %2749 = vmatprep.mubr.msk.bf16.mxu1 %vm2907_vm1, %v2906_v31  ;;  %v2728_v25 = vpop.f32.mrf.mxu1  ;;  %2742 = vmatpush3.bf16.msra.mxu0 %v1739_v23 }
 0x52e   : > { %v1614_v26 = vpack.c.bf16 %v1606_v24, %v1606_v24  ;;  %2753 = vmatprep.subr.bf16.mxu0 %v2906_v31 }
 0x530   : > { %v1785_v27 = vsel %vm1318_vm4, %v1614_v26, 0 }
 0x531   : > { %2748 = vmatpush3.bf16.msra.mxu1 %v1785_v27 }
 0x532   : > { %2759 = vmatprep.subr.bf16.mxu1 %v2906_v31 }
 0x5e8   : > { %v1655_v28 = vpop.f32.mrf.mxu0 }
 0x5e9   : > { %v1707_v29 = vmul.f32 0.25, %v1655_v28 }
 0x5ea   : > { %v2733_v30 = vpop.f32.mrf.mxu0 }
 0x5eb   : > { %v1709_v32 = vadd.f32 %v3198_v16, %v1707_v29 }
 0x5ec   : > { %v1658_v33 = vpop.f32.mrf.mxu0  ;;  %v1701_v34 = vpop.f32.mrf.mxu1 }
 0x5ed   : > { %v1708_v38 = vmul.f32 0.25, %v1701_v34  ;;  %v1711_v39 = vsel %vm1290_vm5, %v1709_v32, -inf }
 0x5ee   : > { %v2739_v40 = vpop.f32.mrf.mxu1  ;;  %1712 = vmax.xlane.f32.xlu0 %v1711_v39  ;;  %v2734_v41 = vpop.f32.mrf.mxu0  ;;  %v2830_v39 = vld [vmem:[%s3093_s9 + $0x8] sm:$0xff]  }
 0x5ef   : > { %v1710_v42 = vadd.f32 %v3193_v11, %v1708_v38  ;;  %v2831_v40 = vld [vmem:[%s3093_s9] sm:$0xff]   ;;  %s3437_s9 = scalar_lea.vmem %s3380_s12, %s3038_s29 }
 0x5f0   : > { %v1704_v43 = vpop.f32.mrf.mxu1 }
 0x5f1   : > { %v1714_v44 = vsel %vm1290_vm5, %v1710_v42, -inf }
 0x5f2   : > { %1715 = vmax.xlane.f32.xlu1 %v1714_v44  ;;  %v2740_v45 = vpop.f32.mrf.mxu1 }
 0x677   : > { %v1713_v46 = vpop.xlane.xlu0 %1712 }
 0x678   : > { %v1717_v47 = vsub.f32 %v1709_v32, %v1713_v46 }
 0x67a   : > { %v1719_v48 = vmul.f32 1.442695, %v1717_v47 }
 0x67b   : > { %v1716_v49 = vpop.xlane.xlu1 %1715 }
 0x67c   : > { %2844 = vpow2.f32 %v1719_v48  ;;  %v1718_v16 = vsub.f32 %v1710_v42, %v1716_v49  ;;  %v2579_v49 = vld [vmem:[%s3437_s9] ss:$0 sm:$0xff] }
 0x67e   : > { %v1721_v50 = vmul.f32 1.442695, %v1718_v16 }
 0x680   : > { %2846 = vpow2.f32 %v1721_v50 }
 0x689   : > { %v2845_v52 = vpop.eup %2844 }
 0x68a   : > { %v1723_v54 = vsel %vm1290_vm5, %v2845_v52, 0.0 }
 0x68b   : > { %1724 = vadd.xlane.f32.xlu0 %v1723_v54  ;;  %v2580_v54 = vld [vmem:[%s3438_s25] ss:$0 sm:$0xff] }
 0x68d   : > { %v2847_v56 = vpop.eup %2846 }
 0x68e   : > { %v1726_v11 = vsel %vm1290_vm5, %v2847_v56, 0.0 }
 0x68f   : > { %1727 = vadd.xlane.f32.xlu1 %v1726_v11 }
 0x714   : > { %v1725_v57 = vpop.xlane.xlu0 %1724 }
 0x715   : > { %2848 = vrcp.f32 %v1725_v57 }
 0x718   : > { %v1728_v58 = vpop.xlane.xlu1 %1727 }
 0x719   : > { %2850 = vrcp.f32 %v1728_v58 }
 0x722   : > { %v2849_v59 = vpop.eup %2848 }
 0x723   : > { %v1731_v60 = vmul.f32 %v2849_v59, %v2845_v52  ;;  %v2832_v59 = vld [vmem:[%s3102_s10 + $0x18] sm:$0xff]  }
 0x725   : > { %v1733_v61 = vpack.c.bf16 %v1731_v60, %v1731_v60  ;;  %v2833_v60 = vld [vmem:[%s3102_s10 + $0x10] sm:$0xff]  }
 0x726   : > { %v2851_v62 = vpop.eup %2850 }
 0x727   : > { %2744 = vmatmul.mubr.msk.bf16.vlgmr.msra.gmra.mxu0 %vm1290_vm5, %v1733_v61  ;;  %v1732_v37 = vmul.f32 %v2851_v62, %v2847_v56  ;;  %v2834_v61 = vld [vmem:[%s3102_s10 + $0x8] sm:$0xff]   ;;  %v2835_v62 = vld [vmem:[%s3102_s10] sm:$0xff]  }
 0x728   : > { %2755 = vmatprep.mubr.msk.bf16.mxu0 %vm2907_vm1, %v2906_v31  ;;  %2754 = vmatpush3.bf16.msra.mxu0 %v2829_v1 }
 0x729   : > { %v1734_v0 = vpack.c.bf16 %v1732_v37, %v1732_v37  ;;  %2765 = vmatprep.subr.bf16.mxu0 %v2906_v31  ;;  %v2581_v37 = vld [vmem:[%s904_s3] ss:$0 sm:$0xff] }
 0x72b   : > { %2750 = vmatmul.mubr.msk.bf16.vlgmr.msra.gmra.mxu1 %vm1290_vm5, %v1734_v0 }
 0x72c   : > { %2760 = vmatpush3.bf16.msra.mxu1 %v2828_v63  ;;  %2761 = vmatprep.mubr.msk.bf16.mxu1 %vm2907_vm1, %v2906_v31 }
 0x72d   : > { %2773 = vmatprep.subr.bf16.mxu1 %v2906_v31 }
 0x733   : > { %2762 = vmatmul.mubr.msk.bf16.vlgmr.msra.gmra.mxu1 %vm1181_vm3, %v1408_v55 }
 0x734   : > { %2781 = vmatprep.mubr.msk.bf16.mxu1 %vm2907_vm1, %v2906_v31  ;;  %2774 = vmatpush3.bf16.msra.mxu1 %v2832_v59 }
 0x735   : > { %2775 = vmatprep.subr.bf16.mxu1 %v2906_v31 }
 0x738   : > { %2776 = vmatpush3.bf16.msra.mxu1 %v2833_v60 }
 0x739   : > { %2777 = vmatprep.subr.bf16.mxu1 %v2906_v31 }
 0x73c   : > { %2778 = vmatpush3.bf16.msra.mxu1 %v2834_v61 }
 0x73d   : > { %2779 = vmatprep.subr.bf16.mxu1 %v2906_v31 }
 0x740   : > { %2780 = vmatpush3.bf16.msra.mxu1 %v2835_v62 }
 0x7e7   : > { %v1775_v2 = vpop.f32.mrf.mxu0 }
 0x7e9   : > { %v2745_v3 = vpop.f32.mrf.mxu0 }
 0x7eb   : > { %v1778_v4 = vpop.f32.mrf.mxu0  ;;  %v1821_v5 = vpop.f32.mrf.mxu1 }
 0x7ec   : > { %v1827_v6 = vpack.c.bf16 %v1821_v5, %v1775_v2 }
 0x7ed   : > { %v2746_v7 = vpop.f32.mrf.mxu0  ;;  %v2751_v8 = vpop.f32.mrf.mxu1 }
 0x7ee   : > { %2756 = vmatmul.mubr.msk.bf16.vlgmr.msra.gmra.mxu0 %vm1181_vm3, %v1827_v6 }
 0x7ef   : > { %v1824_v51 = vpop.f32.mrf.mxu1  ;;  %2769 = vmatprep.mubr.msk.bf16.mxu0 %vm2907_vm1, %v2906_v31  ;;  %2766 = vmatpush3.bf16.msra.mxu0 %v2830_v39 }
 0x7f0   : > { %2767 = vmatprep.subr.bf16.mxu0 %v2906_v31 }
 0x7f1   : > { %v2752_v53 = vpop.f32.mrf.mxu1 }
 0x7f3   : > { %v1924_v55 = vpop.f32.mrf.mxu1  ;;  %2768 = vmatpush3.bf16.msra.mxu0 %v2831_v40 }
 0x7f5   : > { %v2763_v9 = vpop.f32.mrf.mxu1 }
 0x7f7   : > { %v1927_v10 = vpop.f32.mrf.mxu1 }
 0x7f9   : > { %v2764_v12 = vpop.f32.mrf.mxu1 }
 0x8ae   : > { %v1874_v13 = vpop.f32.mrf.mxu0 }
 0x8af   : > { %v1925_v14 = vadd.f32 %v1924_v55, %v1874_v13 }
 0x8b0   : > { %v2757_v15 = vpop.f32.mrf.mxu0 }
 0x8b1   : > { %v1931_v18 = vadd.f32 %v1925_v14, %v3145_v35 }
 0x8b2   : > { %v1877_v19 = vpop.f32.mrf.mxu0 }
 0x8b3   : > { %v1928_v20 = vadd.f32 %v1927_v10, %v1877_v19  ;;  %v1940_v21 = vadd.f32 %v2578_v17, %v1931_v18 }
 0x8b4   : > { %v2758_v22 = vpop.f32.mrf.mxu0 }
 0x8b5   : > { %v1932_v23 = vadd.f32 %v1928_v20, %v3147_v36  ;;  %v1944_v24 = vsel %vm1002_vm2, %v1940_v21, 0.0  ;;  %v2585_v22 = vld [vmem:[%s912_s0] ss:$0 sm:$0xff] }
 0x8b6   : > { %1945 = vadd.xlane.f32.xlu0 %v1944_v24 }
 0x8b7   : > { %v1941_v25 = vadd.f32 %v2578_v17, %v1932_v23 }
 0x8b9   : > { %v1947_v26 = vsel %vm1002_vm2, %v1941_v25, 0.0 }
 0x8ba   : > { %1948 = vadd.xlane.f32.xlu1 %v1947_v26 }
 0x93f   : > { %v1946_v27 = vpop.xlane.xlu0 %1945 }
 0x940   : > { %v1951_v28 = vmul.f32 0.03125, %v1946_v27 }
 0x942   : > { %v1953_v29 = vsub.f32 %v1940_v21, %v1951_v28 }
 0x943   : > { %v1949_v30 = vpop.xlane.xlu1 %1948 }
 0x944   : > { %v1952_v35 = vmul.f32 0.03125, %v1949_v30  ;;  %v1955_v32 = vmul.f32 %v1953_v29, %v1953_v29 }
 0x946   : > { %v1954_v33 = vsub.f32 %v1941_v25, %v1952_v35  ;;  %v1957_v34 = vsel %vm1002_vm2, %v1955_v32, 0.0 }
 0x947   : > { %1958 = vadd.xlane.f32.xlu0 %v1957_v34 }
 0x948   : > { %v1956_v36 = vmul.f32 %v1954_v33, %v1954_v33 }
 0x94a   : > { %v1960_v38 = vsel %vm1002_vm2, %v1956_v36, 0.0 }
 0x94b   : > { %1961 = vadd.xlane.f32.xlu1 %v1960_v38 }
 0x9d0   : > { %v1959_v41 = vpop.xlane.xlu0 %1958 }
 0x9d1   : > { %v1963_v42 = vmul.f32 0.03125, %v1959_v41 }
 0x9d3   : > { %v1965_v43 = vadd.f32 1e-05, %v1963_v42 }
 0x9d4   : > { %v1962_v44 = vpop.xlane.xlu1 %1961 }
 0x9d5   : > { %2852 = vrsqrt.f32 %v1965_v43  ;;  %v1964_v45 = vmul.f32 0.03125, %v1962_v44 }
 0x9d7   : > { %v1966_v46 = vadd.f32 1e-05, %v1964_v45 }
 0x9d9   : > { %2854 = vrsqrt.f32 %v1966_v46 }
 0x9e2   : > { %v2853_v47 = vpop.eup %2852 }
 0x9e3   : > { %v1969_v48 = vmul.f32 %v2853_v47, %v1953_v29 }
 0x9e5   : > { %v1977_v52 = vmul.f32 %v2579_v49, %v1969_v48 }
 0x9e6   : > { %v2855_v16 = vpop.eup %2854 }
 0x9e7   : > { %v1970_v50 = vmul.f32 %v2855_v16, %v1954_v33  ;;  %v1985_v11 = vadd.f32 %v2580_v54, %v1977_v52  ;;  %v2591_v52 = vld [vmem:[%s915_s5] ss:$0 sm:$0xff] }
 0x9e9   : > { %v1978_v56 = vmul.f32 %v2579_v49, %v1970_v50 }
 0x9eb   : > { %v1986_v57 = vadd.f32 %v2580_v54, %v1978_v56  ;;  %v2592_v56 = vld [vmem:[%s918_s24] ss:$0 sm:$0xff] }
 0x9ed   : > { %v1987_v58 = vpack.c.bf16 %v1986_v57, %v1985_v11 }
 0x9ef   : > { %2770 = vmatmul.mubr.msk.bf16.vlgmr.msra.gmra.mxu0 %vm1002_vm2, %v1987_v58 }
 0xaaf   : > { %v2048_v63 = vpop.f32.mrf.mxu0 }
 0xab0   : > { %v2049_v0 = vadd.f32 %v2581_v37, %v2048_v63 }
 0xab1   : > { %v2771_v1 = vpop.f32.mrf.mxu0 }
 0xab2   : > { %v2055_v2 = vmul.f32 %v2049_v0, %v2049_v0 }
 0xab3   : > { %v2051_v3 = vpop.f32.mrf.mxu0 }
 0xab4   : > { %v2057_v4 = vmul.f32 %v2055_v2, %v2049_v0  ;;  %v2052_v5 = vadd.f32 %v2581_v37, %v2051_v3 }
 0xab5   : > { %v2772_v6 = vpop.f32.mrf.mxu0 }
 0xab6   : > { %v2059_v7 = vmul.f32 0.044715, %v2057_v4  ;;  %v2056_v8 = vmul.f32 %v2052_v5, %v2052_v5 }
 0xab8   : > { %v2061_v51 = vadd.f32 %v2059_v7, %v2049_v0  ;;  %v2058_v53 = vmul.f32 %v2056_v8, %v2052_v5 }
 0xaba   : > { %v2063_v31 = vmul.f32 0.7978846, %v2061_v51  ;;  %v2060_v55 = vmul.f32 0.044715, %v2058_v53 }
 0xabc   : > { %2856 = vtanh.f32 %v2063_v31  ;;  %v2062_v9 = vadd.f32 %v2060_v55, %v2052_v5 }
 0xabe   : > { %v2064_v10 = vmul.f32 0.7978846, %v2062_v9 }
 0xac0   : > { %2858 = vtanh.f32 %v2064_v10 }
 0xac9   : > { %v2857_v12 = vpop.eup %2856 }
 0xaca   : > { %v2067_v13 = vadd.f32 1.0, %v2857_v12 }
 0xacc   : > { %v2069_v15 = vmul.f32 0.5, %v2067_v13 }
 0xacd   : > { %v2859_v14 = vpop.eup %2858 }
 0xace   : > { %v2068_v17 = vadd.f32 1.0, %v2859_v14  ;;  %v2071_v19 = vmul.f32 %v2069_v15, %v2049_v0 }
 0xad0   : > { %v2070_v18 = vmul.f32 0.5, %v2068_v17 }
 0xad2   : > { %v2072_v20 = vmul.f32 %v2070_v18, %v2052_v5 }
 0xad4   : > { %v2073_v21 = vpack.c.bf16 %v2072_v20, %v2071_v19 }
 0xad6   : > { %2782 = vmatmul.mubr.msk.bf16.vlgmr.msra.gmra.mxu1 %vm2113_vm6, %v2073_v21 }
 0xb96   : > { %v2151_v23 = vpop.f32.mrf.mxu1 }
 0xb97   : > { %v2152_v24 = vadd.f32 %v2585_v22, %v2151_v23 }
 0xb98   : > { %v2783_v25 = vpop.f32.mrf.mxu1 }
 0xb99   : > { %v2158_v26 = vadd.f32 %v2152_v24, %v1985_v11 }
 0xb9a   : > { %v2154_v27 = vpop.f32.mrf.mxu1 }
 0xb9b   : > { %v2155_v28 = vadd.f32 %v2585_v22, %v2154_v27  ;;  %v2162_v29 = vsel %vm1002_vm2, %v2158_v26, 0.0 }
 0xb9c   : > { %2163 = vadd.xlane.f32.xlu0 %v2162_v29  ;;  %v2784_v30 = vpop.f32.mrf.mxu1 }
 0xb9d   : > { %v2159_v35 = vadd.f32 %v2155_v28, %v1986_v57 }
 0xb9f   : > { %v2165_v32 = vsel %vm1002_vm2, %v2159_v35, 0.0 }
 0xba0   : > { %2166 = vadd.xlane.f32.xlu1 %v2165_v32 }
 0xc25   : > { %v2164_v33 = vpop.xlane.xlu0 %2163 }
 0xc26   : > { %v2168_v34 = vmul.f32 0.03125, %v2164_v33 }
 0xc28   : > { %v2170_v36 = vsub.f32 %v2158_v26, %v2168_v34 }
 0xc29   : > { %v2167_v38 = vpop.xlane.xlu1 %2166 }
 0xc2a   : > { %v2169_v39 = vmul.f32 0.03125, %v2167_v38  ;;  %v2172_v40 = vmul.f32 %v2170_v36, %v2170_v36 }
 0xc2c   : > { %v2171_v41 = vsub.f32 %v2159_v35, %v2169_v39  ;;  %v2174_v42 = vsel %vm1002_vm2, %v2172_v40, 0.0 }
 0xc2d   : > { %2175 = vadd.xlane.f32.xlu0 %v2174_v42 }
 0xc2e   : > { %v2173_v43 = vmul.f32 %v2171_v41, %v2171_v41 }
 0xc30   : > { %v2177_v44 = vsel %vm1002_vm2, %v2173_v43, 0.0 }
 0xc31   : > { %2178 = vadd.xlane.f32.xlu1 %v2177_v44 }
 0xcb6   : > { %v2176_v45 = vpop.xlane.xlu0 %2175 }
 0xcb7   : > { %v2180_v46 = vmul.f32 0.03125, %v2176_v45 }
 0xcb9   : > { %v2182_v47 = vadd.f32 1e-05, %v2180_v46 }
 0xcba   : > { %v2179_v48 = vpop.xlane.xlu1 %2178 }
 0xcbb   : > { %2860 = vrsqrt.f32 %v2182_v47  ;;  %v2181_v49 = vmul.f32 0.03125, %v2179_v48 }
 0xcbd   : > { %v2183_v16 = vadd.f32 1e-05, %v2181_v49 }
 0xcbf   : > { %2862 = vrsqrt.f32 %v2183_v16 }
 0xcc8   : > { %v2861_v50 = vpop.eup %2860 }
 0xcc9   : > { %v2186_v54 = vmul.f32 %v2861_v50, %v2170_v36 }
 0xccb   : > { %v2194_v11 = vmul.f32 %v2591_v52, %v2186_v54 }
 0xccc   : > { %v2863_v57 = vpop.eup %2862 }
 0xccd   : > { %v2202_v58 = vadd.f32 %v2592_v56, %v2194_v11  ;;  %v2187_v59 = vmul.f32 %v2863_v57, %v2171_v41 }
 0xccf   : > { %2204 = vst.msk [vmem:[#allocation2] sm:$0xff] %vm1002_vm2, %v2202_v58  ;;  %v2195_v60 = vmul.f32 %v2591_v52, %v2187_v59  ;;  %2209 = sbr.rel (%p2593_p5) target bundleno = 3662 (0xe4e), region = 116 }
 0xcd1   : > { %v2203_v61 = vadd.f32 %v2592_v56, %v2195_v60 }
 0xcd3   : > { %2205 = vst.msk [vmem:[#allocation2 + $0x8] sm:$0xff] %vm1002_vm2, %v2203_v61 }
 0xcd4   : > { %v2864_v62 = vld [vmem:[%s3440_s1 + $0x8] sm:$0xff]   ;;  %v2210_v37 = vpack.c.bf16 %v2202_v58, %v2202_v58  ;;  %v2211_v63 = vpack.c.bf16 %v2203_v61, %v2203_v61  ;;  %v2908_v0 = vmov 0.0   ;;  %v2865_v1 = vld [vmem:[%s3440_s1] sm:$0xff]   ;;  %vm2909_vm7 = vmmov 0  }
 0xcd5   : > { %2785 = vmatprep.subr.bf16.mxu0 %v2908_v0  ;;  %2789 = vmatprep.mubr.msk.bf16.mxu0 %vm2909_vm7, %v2908_v0  ;;  %vm2228_vm8 = vcmask 1041409   ;;  %v2594_v7 = vld [vmem:[%s3441_s8] ss:$0 sm:$0xff]  ;;  %vm2288_vm9 = vcmask 254976  }
 0xcd6   : > { %2786 = vmatpush3.bf16.msra.mxu0 %v2864_v62  ;;  %v2225_v2 = vunpack.c.l.b16 %v2210_v37  ;;  %v2226_v3 = vunpack.c.l.b16 %v2211_v63 }
 0xcd7   : > { %2787 = vmatprep.subr.bf16.mxu0 %v2908_v0 }
 0xcd8   : > { %v2227_v4 = vrot.slane %v2226_v3, 7 }
 0xcda   : > { %2788 = vmatpush3.bf16.msra.mxu0 %v2865_v1  ;;  %v2229_v5 = vsel %vm2228_vm8, %v2227_v4, %v2225_v2 }
 0xcdb   : > { %v2230_v6 = vpack.c.b16 %v2229_v5, %v2229_v5 }
 0xcdd   : > { %2790 = vmatmul.mubr.msk.bf16.vlgmr.msra.gmra.mxu0 %vm1002_vm2, %v2230_v6 }
 0xd9d   : > { %v2280_v8 = vpop.f32.mrf.mxu0 }
 0xd9e   : > { %v2281_v51 = vadd.f32 %v2594_v7, %v2280_v8 }
 0xd9f   : > { %v2791_v53 = vpop.f32.mrf.mxu0 }
 0xda0   : > { %2866 = vtanh.f32 %v2281_v51 }
 0xda1   : > { %v2283_v31 = vpop.f32.mrf.mxu0 }
 0xda3   : > { %v2792_v55 = vpop.f32.mrf.mxu0 }
 0xdad   : > { %v2867_v9 = vpop.eup %2866 }
 0xdae   : > { %v2287_v10 = vmul.f32 %v2867_v9, %v2867_v9 }
 0xdb0   : > { %v2289_v12 = vsel %vm2288_vm9, %v2287_v10, 0.0 }
 0xdb1   : > { %2290 = vadd.xlane.f32.xlu0 %v2289_v12 }
 0xe3a   : > { %v2291_v13 = vpop.xlane.xlu0 %2290 }
 0xe3b   : > { %v2292_v14 = vmax.f32 %v2291_v13, 1e-24 }
 0xe3d   : > { %2868 = vrsqrt.f32 %v2292_v14 }
 0xe4a   : > { %v2869_v15 = vpop.eup %2868 }
 0xe4b   : > { %v2294_v17 = vmul.f32 %v2869_v15, %v2867_v9 }
 0xe4d   : > { %2295 = vst.msk [vmem:[#allocation3] sm:$0x3] %vm2288_vm9, %v2294_v17 }
 0xe4e PF: > { %s3442_s9 = sld [smem:[#allocation7_spill]]  ;;  %s2910_s23 = smov [#allocation3]  }
 0xe4f   : > { %s2303_s4 = sshll.u32 %s2910_s23, 4  ;;  %s2304_s4 = int_to_ptr.vmem [resolvable:$true] %s2303_s4 }
 0xe50   : > { %s2870_s25 = scalar_lea.vmem %s2304_s4, 32  ;;  %p2877_p10 = scmp.lt.s32.totalorder %s2304_s4, %s2304_s4 }
 0xe51   : > { %p2871_p7 = scmp.ne.s32.totalorder %s2304_s4, %s2870_s25  ;;  %p2878_p11 = scmp.lt.s32.totalorder %s2870_s25, %s2870_s25 }
 0xe53   : > { %p2879_p12 = por %p2878_p11, %p2877_p10 }
 0xe54   : > { %p2797_p6 = scmp.eq.s32.totalorder %s3442_s9, 1 }
 0xe56   : > { %p2872_p8 = pnand %p2871_p7, %p2797_p6 }
 0xe58   : > { %p2873_p9 = pneg %p2872_p8 }
 0xe5a   : > { %p2880_p13 = pnand %p2879_p12, %p2873_p9 }
 0xe5c   : > { %2883 = shalt.err (!%p2880_p13)
}
 0xe5d   : > { %s3443_s10 = sld [smem:[#allocation25_spill]] }
 0xe63   : > { %2794 = dma.vmem_to_hbm [thread:$0]  (%p2797_p6), %s2304_s4, 32, %s3443_s10, [#allocation4]  }
 0xe64   : > { %2899 = dma.done.wait (%p2797_p6), [#allocation4], 32  }
 0xe65   : > { %2901 = vsyncadd (%p2797_p6), [#allocation4], 4294967264 }
 0xe66 PF: > { %s3444_s3 = sld [smem:[#allocation6_spill]] }
 0xe6c   : > { %s33_s3 = sadd.s32 1, %s3444_s3  }
 0xe6d   : > { %p30_p0 = scmp.ge.s32.totalorder %s33_s3, 4  }
 0xe6f   :  { %32 = sbr.rel (!%p30_p0) target bundleno = 17 (0x11), region = 195 }
 0xe74   :  { %2316 = vsyncpa [#allocation4], 1 }
 0xe75   :  { %2318 = vsyncpa [#allocation4 + $0x1], 1 }

</bundles_post_ra>
